<compile_context>
chip_gen: v7x
topology: tpu7x:2x2x1
jax: 0.10.0
libtpu: 0.0.40
codegen_flags: <defaults>
</compile_context>

<pallas_src>
import functools

import numpy as np
import jax
import jax.numpy as jnp
from jax.experimental import pallas as pl
from jax.experimental.pallas import tpu as pltpu

EPS = 1e-5      # BatchNorm1d default eps
C = 64          # in_c (non-resnet branch)
M = 25          # 5 * 5 spatial, fixed by .view(..., 5, 5) in the module


# ---------------------------------------------------------------------------
# Pallas kernel (one episode per grid step)
# ---------------------------------------------------------------------------
def csiw_kernel(x_ref, w_ref, gb_ref, k_ref, out_ref, *, N, B):
    """x_ref:  (N+B, M, C)  row-stacked [support ; query], channels-last
       w_ref:  (C, 4C)      [Wp.T | Wq.T | Wprt.T | Wqry.T]
       gb_ref: (8, C)       rows 0..3 = gamma(p,q,prt,qry), rows 4..7 = beta(...)
       k_ref:  (2M+1, 2M)   [K_p | K_q]; rows = [K_max ; K_mean ; bias]
       out_ref:(N, B*C)     lane-dense output"""
    x = x_ref[...]                                                   # (N+B, M, C)
    W = w_ref[...]                                                   # (C, 4C)
    gb = gb_ref[...]                                                 # (8, C)
    K = k_ref[...]                                                   # (2M+1, 2M)

    NB, Mm, Cc = x.shape

    def bn_tanh(y, g, b):
        # nn.Linear output -> BatchNorm1d (batch stats, biased var) -> tanh -> +1
        mu = jnp.mean(y, axis=0, keepdims=True)
        var = jnp.mean((y - mu) ** 2, axis=0, keepdims=True)
        return 1.0 + jnp.tanh((y - mu) * jax.lax.rsqrt(var + EPS) * g + b)

    # ---- stage 1: S_Block(p / q) on spatial means -- one fused wide matmul --
    x1 = jnp.mean(x, axis=1)                                         # (N+B, C)
    y1 = jnp.dot(x1, W[:, :2 * Cc], preferred_element_type=jnp.float32)
    s = bn_tanh(y1[:N, :Cc], gb[0:1], gb[4:5])                       # (N, C)
    q = bn_tanh(y1[N:, Cc:2 * Cc], gb[1:2], gb[5:6])                 # (B, C)
    xw = x * jnp.concatenate([s, q], axis=0)[:, None, :]             # (N+B, M, C)

    # ---- stage 2: Si_Block -- 3x3 conv as one matmul, bias folded in --------
    mx = jnp.max(xw, axis=-1)                                        # (N+B, M)
    av = jnp.mean(xw, axis=-1)                                       # (N+B, M)
    cat = jnp.concatenate([mx, av, jnp.ones((NB, 1), jnp.float32)], axis=-1)
    conv = jnp.dot(cat, K, preferred_element_type=jnp.float32)       # (N+B, 2M)
    pool = jax.nn.sigmoid(
        jnp.concatenate([conv[:N, :Mm], conv[N:, Mm:]], axis=0))     # (N+B, M)

    # ---- dist + stage 3: S_Block(prt / qry) on -dist -- one fused matmul ----
    dist = jnp.sum((xw - pool[:, :, None]) ** 2, axis=1)             # (N+B, C)
    y2 = jnp.dot(-dist, W[:, 2 * Cc:], preferred_element_type=jnp.float32)
    wps = bn_tanh(y2[:N, :Cc], gb[2:3], gb[6:7])                     # (N, C)
    wqs = bn_tanh(y2[N:, Cc:2 * Cc], gb[3:4], gb[7:8])               # (B, C)

    out = 0.5 * wps[:, None, :] + 0.5 * wqs[None, :, :]              # (N, B, C)
    out_ref[...] = out.reshape(N, B * Cc)                            # lane-dense


def _csiw_pallas(x_e, Wpk, gb, Kpk, N, B):
    E, NB, Mm, Cc = x_e.shape
    kernel = functools.partial(csiw_kernel, N=N, B=B)
    return pl.pallas_call(
        kernel,
        out_shape=jax.ShapeDtypeStruct((E, N, B * Cc), jnp.float32),
        grid=(E,),
        in_specs=[
            pl.BlockSpec((None, NB, Mm, Cc), lambda e: (e, 0, 0, 0)),
            pl.BlockSpec((Cc, 4 * Cc), lambda e: (0, 0)),
            pl.BlockSpec((8, Cc), lambda e: (0, 0)),
            pl.BlockSpec((2 * Mm + 1, 2 * Mm), lambda e: (0, 0)),
        ],
        out_specs=pl.BlockSpec((None, N, B * Cc), lambda e: (e, 0, 0)),
        compiler_params=pltpu.CompilerParams(
            dimension_semantics=("parallel",)),
    )(x_e, Wpk, gb, Kpk)


# ---------------------------------------------------------------------------
# Plain-JAX glue: parameters, one-time packing, wrappers
# ---------------------------------------------------------------------------
def conv_to_aug(conv_w, conv_b):
    """Conv2d(2->1, k=3, pad=1) on a 5x5 grid -> (2M+1, M) matrix acting on
    row vectors [max_pool(M) | avg_pool(M) | 1] (bias folded into last row)."""
    w = np.asarray(conv_w, np.float32)
    K = np.zeros((2 * M + 1, M), np.float32)
    for ci in range(2):
        for i in range(5):
            for j in range(5):
                for di in range(3):
                    for dj in range(3):
                        r, s_ = i + di - 1, j + dj - 1
                        if 0 <= r < 5 and 0 <= s_ < 5:
                            K[ci * M + 5 * r + s_, 5 * i + j] = w[0, ci, di, dj]
    K[2 * M, :] = float(np.asarray(conv_b)[0])
    return jnp.asarray(K)


def make_params(key):
    ks = jax.random.split(key, 6)
    params = {}

    def xavier(k, shape):
        fan_out, fan_in = shape
        bound = float(np.sqrt(6.0 / (fan_in + fan_out)))
        return jax.random.uniform(k, shape, jnp.float32, -bound, bound)

    for name, k in zip(["p", "q", "prt", "qry"], ks[:4]):
        params[f"w_{name}"] = xavier(k, (C, C))               # PyTorch (out, in)
        params[f"g_{name}"] = jnp.ones((1, C), jnp.float32)   # BN gamma
        params[f"b_{name}"] = jnp.zeros((1, C), jnp.float32)  # BN beta

    for name, k in zip(["sp", "sq"], ks[4:6]):
        k1, k2 = jax.random.split(k)
        bound = float(np.sqrt(1.0 / (2 * 9)))
        params[f"convw_{name}"] = jax.random.uniform(k1, (1, 2, 3, 3),
                                                     jnp.float32, -bound, bound)
        params[f"convb_{name}"] = jax.random.uniform(k2, (1,),
                                                     jnp.float32, -bound, bound)
    return params


def pack_params(params):
    """One-time packing of the 18 tiny parameter tensors into 3 DMA slabs."""
    Wpk = jnp.concatenate([params["w_p"].T, params["w_q"].T,
                           params["w_prt"].T, params["w_qry"].T],
                          axis=1).astype(jnp.float32)                 # (C, 4C)
    gb = jnp.concatenate([params["g_p"], params["g_q"],
                          params["g_prt"], params["g_qry"],
                          params["b_p"], params["b_q"],
                          params["b_prt"], params["b_qry"]],
                         axis=0).astype(jnp.float32)                  # (8, C)
    Kpk = jnp.concatenate(
        [conv_to_aug(params["convw_sp"], params["convb_sp"]),
         conv_to_aug(params["convw_sq"], params["convb_sq"])],
        axis=1)                                                       # (2M+1, 2M)
    return {"W": Wpk, "gb": gb, "K": Kpk}


@jax.jit
def csiw_forward_episodes(spt_e, qry_e, packed):
    """Batched episodes: spt_e (E, way, shot, C, M), qry_e (E, batch, 1, C, M)
       -> (E, way*shot, batch, C).  One pallas_call, grid=(E,), parallel."""
    E, way, shot, c, m = spt_e.shape
    batch = qry_e.shape[1]
    N = way * shot
    spt3 = spt_e.reshape(E, N, c, m)
    qry3 = qry_e.reshape(E, batch, c, m)
    # Row-stack support + query and go channels-last: (E, N+B, M, C).
    x = jnp.transpose(jnp.concatenate([spt3, qry3], axis=1),
                      (0, 1, 3, 2)).astype(jnp.float32)
    out2d = _csiw_pallas(x, packed["W"], packed["gb"], packed["K"], N, batch)
    return out2d.reshape(E, N, batch, c)


def csiw_forward(spt, qry, packed):
    """Single-episode forward matching CSIW.forward(spt, qry)."""
    return csiw_forward_episodes(spt[None], qry[None], packed)[0]


# ---------------------------------------------------------------------------
# Pure-JAX reference (uses a real conv) for correctness checking
# ---------------------------------------------------------------------------
def csiw_ref(spt, qry, params):
    way, shot, c, m = spt.shape
    B = qry.shape[0]
    prt = spt.reshape(way * shot, c, m)
    q3 = qry.reshape(B, c, m)

    def s_block(x, W, g, b):
        y = x @ W.T
        mu = y.mean(0, keepdims=True)
        var = ((y - mu) ** 2).mean(0, keepdims=True)
        y = (y - mu) / jnp.sqrt(var + EPS) * g + b
        return 1.0 + jnp.tanh(y)

    def si_block(x, cw, cb):
        x4 = x.reshape(x.shape[0], c, 5, 5)
        mx = x4.max(axis=1, keepdims=True)
        av = x4.mean(axis=1, keepdims=True)
        cat = jnp.concatenate([mx, av], axis=1)
        conv = jax.lax.conv_general_dilated(
            cat, cw, (1, 1), "SAME",
            dimension_numbers=("NCHW", "OIHW", "NCHW")) + cb.reshape(1, 1, 1, 1)
        return jax.nn.sigmoid(conv).reshape(x.shape[0], m)

    s = s_block(prt.mean(-1), params["w_p"], params["g_p"], params["b_p"])
    qs = s_block(q3.mean(-1), params["w_q"], params["g_q"], params["b_q"])
    prt_w = prt * s[:, :, None]
    qry_w = q3 * qs[:, :, None]
    prt2 = si_block(prt_w, params["convw_sp"], params["convb_sp"])
    qry2 = si_block(qry_w, params["convw_sq"], params["convb_sq"])
    dist1 = ((prt_w - prt2[:, None, :]) ** 2).sum(-1)
    dist2 = ((qry_w - qry2[:, None, :]) ** 2).sum(-1)
    wps = s_block(-dist1, params["w_prt"], params["g_prt"], params["b_prt"])
    wqs = s_block(-dist2, params["w_qry"], params["g_qry"], params["b_qry"])
    return 0.5 * wps[:, None, :] + 0.5 * wqs[None, :, :]


if __name__ == "__main__":
    key = jax.random.PRNGKey(0)
    kparam, kspt, kqry = jax.random.split(key, 3)
    params = make_params(kparam)
    packed = pack_params(params)          # done once, outside the hot path

    way, shot, batch = 2, 3, 4
    spt = jax.random.normal(kspt, (way, shot, C, M), jnp.float32)
    qry = jax.random.normal(kqry, (batch, 1, C, M), jnp.float32)

    out = jax.block_until_ready(csiw_forward(spt, qry, packed))
    ref = jax.block_until_ready(csiw_ref(spt, qry, params))
    assert out.shape == (way * shot, batch, C)
    np.testing.assert_allclose(np.asarray(out), np.asarray(ref),
                               atol=5e-3, rtol=5e-3)

    # Multi-episode path: one pallas_call, grid=(E,), "parallel" episode axis.
    E = 3
    ke1, ke2 = jax.random.split(jax.random.PRNGKey(1))
    spt_e = jax.random.normal(ke1, (E, way, shot, C, M), jnp.float32)
    qry_e = jax.random.normal(ke2, (E, batch, 1, C, M), jnp.float32)
    out_e = jax.block_until_ready(csiw_forward_episodes(spt_e, qry_e, packed))
    for e in range(E):
        np.testing.assert_allclose(
            np.asarray(out_e[e]),
            np.asarray(csiw_ref(spt_e[e], qry_e[e], params)),
            atol=5e-3, rtol=5e-3)

    print("KERNEL_OK")
</pallas_src>

<mosaic_0001>
module attributes {stable_mosaic.version = 11 : i64} {
  func.func @csiw_kernel(%arg0: i32, %arg1: memref<1x10x25x64xf32, #tpu.memory_space<vmem>>, %arg2: memref<64x256xf32, #tpu.memory_space<vmem>>, %arg3: memref<8x64xf32, #tpu.memory_space<vmem>>, %arg4: memref<51x50xf32, #tpu.memory_space<vmem>>, %arg5: memref<1x6x256xf32, #tpu.memory_space<vmem>>) attributes {dimension_semantics = [#tpu.dimension_semantics<parallel>], iteration_bounds = array<i64: 1>, scalar_prefetch = 0 : i64, scratch_operands = 0 : i64, tpu.core_type = #tpu.core_type<tc>, window_params = [{transform_indices = @transform_0, window_bounds = array<i64: 1, 10, 25, 64>}, {pipeline_mode = #tpu.pipeline_mode<synchronous>, transform_indices = @transform_1, window_bounds = array<i64: 64, 256>}, {pipeline_mode = #tpu.pipeline_mode<synchronous>, transform_indices = @transform_2, window_bounds = array<i64: 8, 64>}, {pipeline_mode = #tpu.pipeline_mode<synchronous>, transform_indices = @transform_3, window_bounds = array<i64: 51, 50>}, {transform_indices = @transform_4, window_bounds = array<i64: 1, 6, 256>}]} {
    %c0 = arith.constant 0 : index
    %c0_0 = arith.constant 0 : index
    %c0_1 = arith.constant 0 : index
    %c0_2 = arith.constant 0 : index
    %0 = vector.load %arg1[%c0, %c0_0, %c0_1, %c0_2] : memref<1x10x25x64xf32, #tpu.memory_space<vmem>>, vector<1x10x25x64xf32>
    %1 = vector.shape_cast %0 : vector<1x10x25x64xf32> to vector<10x25x64xf32>
    %c0_3 = arith.constant 0 : index
    %c0_4 = arith.constant 0 : index
    %2 = vector.load %arg2[%c0_3, %c0_4] : memref<64x256xf32, #tpu.memory_space<vmem>>, vector<64x256xf32>
    %c0_5 = arith.constant 0 : index
    %c0_6 = arith.constant 0 : index
    %3 = vector.load %arg3[%c0_5, %c0_6] : memref<8x64xf32, #tpu.memory_space<vmem>>, vector<8x64xf32>
    %c0_7 = arith.constant 0 : index
    %c0_8 = arith.constant 0 : index
    %4 = vector.load %arg4[%c0_7, %c0_8] : memref<51x50xf32, #tpu.memory_space<vmem>>, vector<51x50xf32>
    %cst = arith.constant dense<0.000000e+00> : vector<10x64xf32>
    %5 = vector.multi_reduction <add>, %1, %cst [1] : vector<10x25x64xf32> to vector<10x64xf32>
    %cst_9 = arith.constant 2.500000e+01 : f32
    %6 = vector.broadcast %cst_9 : f32 to vector<10x64xf32>
    %7 = arith.divf %5, %6 : vector<10x64xf32>
    %8 = vector.extract_strided_slice %2 {offsets = [0, 0], sizes = [64, 128], strides = [1, 1]} : vector<64x256xf32> to vector<64x128xf32>
    %cst_10 = arith.constant dense<0.000000e+00> : vector<10x128xf32>
    %9 = tpu.matmul %7, %8, %cst_10 {dimension_numbers = #tpu.dot_dimension_numbers<[1], [0], [0], [1], [0, 0, 1, 1], [], []>} : vector<10x64xf32>, vector<64x128xf32>, vector<10x128xf32> -> vector<10x128xf32>
    %10 = vector.extract_strided_slice %9 {offsets = [0, 0], sizes = [6, 64], strides = [1, 1]} : vector<10x128xf32> to vector<6x64xf32>
    %11 = vector.extract_strided_slice %3 {offsets = [0, 0], sizes = [1, 64], strides = [1, 1]} : vector<8x64xf32> to vector<1x64xf32>
    %12 = vector.extract_strided_slice %3 {offsets = [4, 0], sizes = [1, 64], strides = [1, 1]} : vector<8x64xf32> to vector<1x64xf32>
    %cst_11 = arith.constant dense<0.000000e+00> : vector<64xf32>
    %13 = vector.multi_reduction <add>, %10, %cst_11 [0] : vector<6x64xf32> to vector<64xf32>
    %14 = vector.shape_cast %13 : vector<64xf32> to vector<1x64xf32>
    %cst_12 = arith.constant 6.000000e+00 : f32
    %15 = vector.broadcast %cst_12 : f32 to vector<1x64xf32>
    %16 = arith.divf %14, %15 : vector<1x64xf32>
    %17 = vector.broadcast %16 : vector<1x64xf32> to vector<6x64xf32>
    %18 = arith.subf %10, %17 : vector<6x64xf32>
    %19 = arith.mulf %18, %18 : vector<6x64xf32>
    %cst_13 = arith.constant dense<0.000000e+00> : vector<64xf32>
    %20 = vector.multi_reduction <add>, %19, %cst_13 [0] : vector<6x64xf32> to vector<64xf32>
    %21 = vector.shape_cast %20 : vector<64xf32> to vector<1x64xf32>
    %cst_14 = arith.constant 6.000000e+00 : f32
    %22 = vector.broadcast %cst_14 : f32 to vector<1x64xf32>
    %23 = arith.divf %21, %22 : vector<1x64xf32>
    %24 = vector.broadcast %16 : vector<1x64xf32> to vector<6x64xf32>
    %25 = arith.subf %10, %24 : vector<6x64xf32>
    %cst_15 = arith.constant 9.99999974E-6 : f32
    %26 = vector.broadcast %cst_15 : f32 to vector<1x64xf32>
    %27 = arith.addf %23, %26 : vector<1x64xf32>
    %28 = math.rsqrt %27 : vector<1x64xf32>
    %29 = vector.broadcast %28 : vector<1x64xf32> to vector<6x64xf32>
    %30 = arith.mulf %25, %29 : vector<6x64xf32>
    %31 = vector.broadcast %11 : vector<1x64xf32> to vector<6x64xf32>
    %32 = arith.mulf %30, %31 : vector<6x64xf32>
    %33 = vector.broadcast %12 : vector<1x64xf32> to vector<6x64xf32>
    %34 = arith.addf %32, %33 : vector<6x64xf32>
    %35 = math.tanh %34 : vector<6x64xf32>
    %cst_16 = arith.constant 1.000000e+00 : f32
    %36 = vector.broadcast %cst_16 : f32 to vector<6x64xf32>
    %37 = arith.addf %36, %35 : vector<6x64xf32>
    %38 = vector.extract_strided_slice %9 {offsets = [6, 64], sizes = [4, 64], strides = [1, 1]} : vector<10x128xf32> to vector<4x64xf32>
    %39 = vector.extract_strided_slice %3 {offsets = [1, 0], sizes = [1, 64], strides = [1, 1]} : vector<8x64xf32> to vector<1x64xf32>
    %40 = vector.extract_strided_slice %3 {offsets = [5, 0], sizes = [1, 64], strides = [1, 1]} : vector<8x64xf32> to vector<1x64xf32>
    %cst_17 = arith.constant dense<0.000000e+00> : vector<64xf32>
    %41 = vector.multi_reduction <add>, %38, %cst_17 [0] : vector<4x64xf32> to vector<64xf32>
    %42 = vector.shape_cast %41 : vector<64xf32> to vector<1x64xf32>
    %cst_18 = arith.constant 4.000000e+00 : f32
    %43 = vector.broadcast %cst_18 : f32 to vector<1x64xf32>
    %44 = arith.divf %42, %43 : vector<1x64xf32>
    %45 = vector.broadcast %44 : vector<1x64xf32> to vector<4x64xf32>
    %46 = arith.subf %38, %45 : vector<4x64xf32>
    %47 = arith.mulf %46, %46 : vector<4x64xf32>
    %cst_19 = arith.constant dense<0.000000e+00> : vector<64xf32>
    %48 = vector.multi_reduction <add>, %47, %cst_19 [0] : vector<4x64xf32> to vector<64xf32>
    %49 = vector.shape_cast %48 : vector<64xf32> to vector<1x64xf32>
    %cst_20 = arith.constant 4.000000e+00 : f32
    %50 = vector.broadcast %cst_20 : f32 to vector<1x64xf32>
    %51 = arith.divf %49, %50 : vector<1x64xf32>
    %52 = vector.broadcast %44 : vector<1x64xf32> to vector<4x64xf32>
    %53 = arith.subf %38, %52 : vector<4x64xf32>
    %cst_21 = arith.constant 9.99999974E-6 : f32
    %54 = vector.broadcast %cst_21 : f32 to vector<1x64xf32>
    %55 = arith.addf %51, %54 : vector<1x64xf32>
    %56 = math.rsqrt %55 : vector<1x64xf32>
    %57 = vector.broadcast %56 : vector<1x64xf32> to vector<4x64xf32>
    %58 = arith.mulf %53, %57 : vector<4x64xf32>
    %59 = vector.broadcast %39 : vector<1x64xf32> to vector<4x64xf32>
    %60 = arith.mulf %58, %59 : vector<4x64xf32>
    %61 = vector.broadcast %40 : vector<1x64xf32> to vector<4x64xf32>
    %62 = arith.addf %60, %61 : vector<4x64xf32>
    %63 = math.tanh %62 : vector<4x64xf32>
    %cst_22 = arith.constant 1.000000e+00 : f32
    %64 = vector.broadcast %cst_22 : f32 to vector<4x64xf32>
    %65 = arith.addf %64, %63 : vector<4x64xf32>
    %66 = tpu.concatenate %37, %65 in 0 : vector<6x64xf32>, vector<4x64xf32> -> vector<10x64xf32>
    %67 = vector.shape_cast %66 : vector<10x64xf32> to vector<10x1x64xf32>
    %68 = vector.broadcast %67 : vector<10x1x64xf32> to vector<10x25x64xf32>
    %69 = arith.mulf %1, %68 : vector<10x25x64xf32>
    %cst_23 = arith.constant dense<0xFF800000> : vector<10x25xf32>
    %70 = vector.multi_reduction <maximumf>, %69, %cst_23 [2] : vector<10x25x64xf32> to vector<10x25xf32>
    %cst_24 = arith.constant dense<0.000000e+00> : vector<10x25xf32>
    %71 = vector.multi_reduction <add>, %69, %cst_24 [2] : vector<10x25x64xf32> to vector<10x25xf32>
    %cst_25 = arith.constant 6.400000e+01 : f32
    %72 = vector.broadcast %cst_25 : f32 to vector<10x25xf32>
    %73 = arith.divf %71, %72 : vector<10x25xf32>
    %cst_26 = arith.constant 1.000000e+00 : f32
    %74 = vector.broadcast %cst_26 : f32 to vector<10x1xf32>
    %75 = tpu.concatenate %70, %73, %74 in 1 : vector<10x25xf32>, vector<10x25xf32>, vector<10x1xf32> -> vector<10x51xf32>
    %cst_27 = arith.constant dense<0.000000e+00> : vector<10x50xf32>
    %76 = tpu.matmul %75, %4, %cst_27 {dimension_numbers = #tpu.dot_dimension_numbers<[1], [0], [0], [1], [0, 0, 1, 1], [], []>} : vector<10x51xf32>, vector<51x50xf32>, vector<10x50xf32> -> vector<10x50xf32>
    %77 = vector.extract_strided_slice %76 {offsets = [0, 0], sizes = [6, 25], strides = [1, 1]} : vector<10x50xf32> to vector<6x25xf32>
    %78 = vector.extract_strided_slice %76 {offsets = [6, 25], sizes = [4, 25], strides = [1, 1]} : vector<10x50xf32> to vector<4x25xf32>
    %79 = tpu.concatenate %77, %78 in 0 : vector<6x25xf32>, vector<4x25xf32> -> vector<10x25xf32>
    %80 = arith.negf %79 : vector<10x25xf32>
    %81 = math.exp %80 : vector<10x25xf32>
    %cst_28 = arith.constant 1.000000e+00 : f32
    %82 = vector.broadcast %cst_28 : f32 to vector<10x25xf32>
    %83 = arith.addf %82, %81 : vector<10x25xf32>
    %84 = arith.divf %82, %83 : vector<10x25xf32>
    %85 = vector.shape_cast %84 : vector<10x25xf32> to vector<10x25x1xf32>
    %86 = vector.broadcast %85 : vector<10x25x1xf32> to vector<10x25x64xf32>
    %87 = arith.subf %69, %86 : vector<10x25x64xf32>
    %88 = arith.mulf %87, %87 : vector<10x25x64xf32>
    %cst_29 = arith.constant dense<0.000000e+00> : vector<10x64xf32>
    %89 = vector.multi_reduction <add>, %88, %cst_29 [1] : vector<10x25x64xf32> to vector<10x64xf32>
    %cst_30 = arith.constant 0.000000e+00 : f32
    %90 = vector.broadcast %cst_30 : f32 to vector<10x64xf32>
    %91 = arith.subf %90, %89 : vector<10x64xf32>
    %92 = vector.extract_strided_slice %2 {offsets = [0, 128], sizes = [64, 128], strides = [1, 1]} : vector<64x256xf32> to vector<64x128xf32>
    %cst_31 = arith.constant dense<0.000000e+00> : vector<10x128xf32>
    %93 = tpu.matmul %91, %92, %cst_31 {dimension_numbers = #tpu.dot_dimension_numbers<[1], [0], [0], [1], [0, 0, 1, 1], [], []>} : vector<10x64xf32>, vector<64x128xf32>, vector<10x128xf32> -> vector<10x128xf32>
    %94 = vector.extract_strided_slice %93 {offsets = [0, 0], sizes = [6, 64], strides = [1, 1]} : vector<10x128xf32> to vector<6x64xf32>
    %95 = vector.extract_strided_slice %3 {offsets = [2, 0], sizes = [1, 64], strides = [1, 1]} : vector<8x64xf32> to vector<1x64xf32>
    %96 = vector.extract_strided_slice %3 {offsets = [6, 0], sizes = [1, 64], strides = [1, 1]} : vector<8x64xf32> to vector<1x64xf32>
    %cst_32 = arith.constant dense<0.000000e+00> : vector<64xf32>
    %97 = vector.multi_reduction <add>, %94, %cst_32 [0] : vector<6x64xf32> to vector<64xf32>
    %98 = vector.shape_cast %97 : vector<64xf32> to vector<1x64xf32>
    %cst_33 = arith.constant 6.000000e+00 : f32
    %99 = vector.broadcast %cst_33 : f32 to vector<1x64xf32>
    %100 = arith.divf %98, %99 : vector<1x64xf32>
    %101 = vector.broadcast %100 : vector<1x64xf32> to vector<6x64xf32>
    %102 = arith.subf %94, %101 : vector<6x64xf32>
    %103 = arith.mulf %102, %102 : vector<6x64xf32>
    %cst_34 = arith.constant dense<0.000000e+00> : vector<64xf32>
    %104 = vector.multi_reduction <add>, %103, %cst_34 [0] : vector<6x64xf32> to vector<64xf32>
    %105 = vector.shape_cast %104 : vector<64xf32> to vector<1x64xf32>
    %cst_35 = arith.constant 6.000000e+00 : f32
    %106 = vector.broadcast %cst_35 : f32 to vector<1x64xf32>
    %107 = arith.divf %105, %106 : vector<1x64xf32>
    %108 = vector.broadcast %100 : vector<1x64xf32> to vector<6x64xf32>
    %109 = arith.subf %94, %108 : vector<6x64xf32>
    %cst_36 = arith.constant 9.99999974E-6 : f32
    %110 = vector.broadcast %cst_36 : f32 to vector<1x64xf32>
    %111 = arith.addf %107, %110 : vector<1x64xf32>
    %112 = math.rsqrt %111 : vector<1x64xf32>
    %113 = vector.broadcast %112 : vector<1x64xf32> to vector<6x64xf32>
    %114 = arith.mulf %109, %113 : vector<6x64xf32>
    %115 = vector.broadcast %95 : vector<1x64xf32> to vector<6x64xf32>
    %116 = arith.mulf %114, %115 : vector<6x64xf32>
    %117 = vector.broadcast %96 : vector<1x64xf32> to vector<6x64xf32>
    %118 = arith.addf %116, %117 : vector<6x64xf32>
    %119 = math.tanh %118 : vector<6x64xf32>
    %cst_37 = arith.constant 1.000000e+00 : f32
    %120 = vector.broadcast %cst_37 : f32 to vector<6x64xf32>
    %121 = arith.addf %120, %119 : vector<6x64xf32>
    %122 = vector.extract_strided_slice %93 {offsets = [6, 64], sizes = [4, 64], strides = [1, 1]} : vector<10x128xf32> to vector<4x64xf32>
    %123 = vector.extract_strided_slice %3 {offsets = [3, 0], sizes = [1, 64], strides = [1, 1]} : vector<8x64xf32> to vector<1x64xf32>
    %124 = vector.extract_strided_slice %3 {offsets = [7, 0], sizes = [1, 64], strides = [1, 1]} : vector<8x64xf32> to vector<1x64xf32>
    %cst_38 = arith.constant dense<0.000000e+00> : vector<64xf32>
    %125 = vector.multi_reduction <add>, %122, %cst_38 [0] : vector<4x64xf32> to vector<64xf32>
    %126 = vector.shape_cast %125 : vector<64xf32> to vector<1x64xf32>
    %cst_39 = arith.constant 4.000000e+00 : f32
    %127 = vector.broadcast %cst_39 : f32 to vector<1x64xf32>
    %128 = arith.divf %126, %127 : vector<1x64xf32>
    %129 = vector.broadcast %128 : vector<1x64xf32> to vector<4x64xf32>
    %130 = arith.subf %122, %129 : vector<4x64xf32>
    %131 = arith.mulf %130, %130 : vector<4x64xf32>
    %cst_40 = arith.constant dense<0.000000e+00> : vector<64xf32>
    %132 = vector.multi_reduction <add>, %131, %cst_40 [0] : vector<4x64xf32> to vector<64xf32>
    %133 = vector.shape_cast %132 : vector<64xf32> to vector<1x64xf32>
    %cst_41 = arith.constant 4.000000e+00 : f32
    %134 = vector.broadcast %cst_41 : f32 to vector<1x64xf32>
    %135 = arith.divf %133, %134 : vector<1x64xf32>
    %136 = vector.broadcast %128 : vector<1x64xf32> to vector<4x64xf32>
    %137 = arith.subf %122, %136 : vector<4x64xf32>
    %cst_42 = arith.constant 9.99999974E-6 : f32
    %138 = vector.broadcast %cst_42 : f32 to vector<1x64xf32>
    %139 = arith.addf %135, %138 : vector<1x64xf32>
    %140 = math.rsqrt %139 : vector<1x64xf32>
    %141 = vector.broadcast %140 : vector<1x64xf32> to vector<4x64xf32>
    %142 = arith.mulf %137, %141 : vector<4x64xf32>
    %143 = vector.broadcast %123 : vector<1x64xf32> to vector<4x64xf32>
    %144 = arith.mulf %142, %143 : vector<4x64xf32>
    %145 = vector.broadcast %124 : vector<1x64xf32> to vector<4x64xf32>
    %146 = arith.addf %144, %145 : vector<4x64xf32>
    %147 = math.tanh %146 : vector<4x64xf32>
    %cst_43 = arith.constant 1.000000e+00 : f32
    %148 = vector.broadcast %cst_43 : f32 to vector<4x64xf32>
    %149 = arith.addf %148, %147 : vector<4x64xf32>
    %150 = vector.shape_cast %121 : vector<6x64xf32> to vector<6x1x64xf32>
    %cst_44 = arith.constant 5.000000e-01 : f32
    %151 = vector.broadcast %cst_44 : f32 to vector<6x1x64xf32>
    %152 = arith.mulf %151, %150 : vector<6x1x64xf32>
    %153 = vector.shape_cast %149 : vector<4x64xf32> to vector<1x4x64xf32>
    %cst_45 = arith.constant 5.000000e-01 : f32
    %154 = vector.broadcast %cst_45 : f32 to vector<1x4x64xf32>
    %155 = arith.mulf %154, %153 : vector<1x4x64xf32>
    %156 = vector.broadcast %152 : vector<6x1x64xf32> to vector<6x4x64xf32>
    %157 = vector.broadcast %155 : vector<1x4x64xf32> to vector<6x4x64xf32>
    %158 = arith.addf %156, %157 : vector<6x4x64xf32>
    %159 = vector.shape_cast %158 : vector<6x4x64xf32> to vector<6x256xf32>
    %c0_46 = arith.constant 0 : index
    %c0_47 = arith.constant 0 : index
    %c0_48 = arith.constant 0 : index
    %160 = vector.load %arg5[%c0_46, %c0_47, %c0_48] : memref<1x6x256xf32, #tpu.memory_space<vmem>>, vector<1x6x256xf32>
    %161 = vector.shape_cast %160 : vector<1x6x256xf32> to vector<6x256xf32>
    %162 = vector.shape_cast %159 : vector<6x256xf32> to vector<1x6x256xf32>
    tpu.vector_store %arg5[%c0_46, %c0_47, %c0_48], %162 {strides = array<i32>} : memref<1x6x256xf32, #tpu.memory_space<vmem>>, vector<1x6x256xf32>,
    return
  }
  func.func @transform_0(%arg0: i32) -> (i32, i32, i32, i32) {
    %c0_i32 = arith.constant 0 : i32
    %c0_i32_0 = arith.constant 0 : i32
    %c0_i32_1 = arith.constant 0 : i32
    %c0_i32_2 = arith.constant 0 : i32
    return %arg0, %c0_i32, %c0_i32_0, %c0_i32_1 : i32, i32, i32, i32
  }
  func.func @transform_1(%arg0: i32) -> (i32, i32) {
    %c0_i32 = arith.constant 0 : i32
    %c0_i32_0 = arith.constant 0 : i32
    %c0_i32_1 = arith.constant 0 : i32
    return %c0_i32, %c0_i32_0 : i32, i32
  }
  func.func @transform_2(%arg0: i32) -> (i32, i32) {
    %c0_i32 = arith.constant 0 : i32
    %c0_i32_0 = arith.constant 0 : i32
    %c0_i32_1 = arith.constant 0 : i32
    return %c0_i32, %c0_i32_0 : i32, i32
  }
  func.func @transform_3(%arg0: i32) -> (i32, i32) {
    %c0_i32 = arith.constant 0 : i32
    %c0_i32_0 = arith.constant 0 : i32
    %c0_i32_1 = arith.constant 0 : i32
    return %c0_i32, %c0_i32_0 : i32, i32
  }
  func.func @transform_4(%arg0: i32) -> (i32, i32, i32) {
    %c0_i32 = arith.constant 0 : i32
    %c0_i32_0 = arith.constant 0 : i32
    %c0_i32_1 = arith.constant 0 : i32
    return %arg0, %c0_i32, %c0_i32_0 : i32, i32, i32
  }
}

</mosaic_0001>

<bundles_post_ra>
// kernel: csiw_forward_episodes.1
= control target key start
LH: loop header
LB: loop body
LE: loop exit
PB: predicated region body
PF: predicated region fallthrough
CT: control target
= control target key end

     0   :  { %vm81_vm0 = vcmask 523264   ;;  %vm87_vm1 = vcmask 516096   ;;  %v3684_v33 = vlaneseq  ;;  %vm234_vm2 = vcmask 1041409   ;;  %s2451_s8 = smov 64   ;;  %s3679_s1 = inlined_call_operand.vmem [shape: f32[64,256], index: 1, kind: input, shape index: {}]   ;;  %s3680_s0 = inlined_call_operand.vmem [shape: f32[1,10,25,64], index: 0, kind: input, shape index: {}]   ;;  %s3681_s2 = inlined_call_operand.vmem [shape: f32[8,64], index: 2, kind: input, shape index: {}]   ;;  %s3682_s3 = inlined_call_operand.vmem [shape: f32[51,50], index: 3, kind: input, shape index: {}]   ;;  %s3683_s4 = inlined_call_operand.vmem [shape: f32[1,6,256], index: 4, kind: output, shape index: {}]  }
   0x1   :  { %v57_v0 = vld [vmem:[%s3679_s1] sm:$0xff]  ;;  %v59_v1 = vld [vmem:[%s3679_s1 + $0x10] sm:$0xff]  ;;  %v2513_v11 = vld [vmem:[%s3680_s0 + $0x8] sm:$0xff]  ;;  %vm236_vm3 = vcmask 1042434   ;;  %vm3727_vm4 = vcmask 1043459   ;;  %vm3726_vm5 = vcmask 1044484  }
   0x2   :  { %v61_v2 = vld [vmem:[%s3679_s1 + $0x20] sm:$0xff]  ;;  %v2373_v3 = vpack.c.bf16 %v59_v1, %v57_v0  ;;  %v63_v4 = vld [vmem:[%s3679_s1 + $0x30] sm:$0xff]  ;;  %v2523_v13 = vld [vmem:[%s3680_s0 + $0x18] sm:$0x1]  ;;  %v83_v18 = vsel %vm81_vm0, %v2513_v11, 0.0  ;;  %v2638_v59 = vshrl.u32 %v3684_v33, 7 }
   0x3   :  { %v2377_v5 = vpack.c.bf16 %v63_v4, %v61_v2  ;;  %v65_v6 = vld [vmem:[%s3679_s1 + $0x40] sm:$0xff]  ;;  %v67_v7 = vld [vmem:[%s3679_s1 + $0x50] sm:$0xff]  ;;  %v2535_v16 = vld [vmem:[%s3680_s0 + $0x28] sm:$0xff]  ;;  %v88_v30 = vsel %vm87_vm1, %v2523_v13, 0.0  ;;  %vm242_vm6 = vcmask 1045509   ;;  %vm244_vm7 = vcmask 1046534  }
   0x4   :  { %v2502_v8 = vld [vmem:[%s3680_s0] sm:$0xff]  ;;  %2374 = vmatprep.subr.bf16.mxu0 %v2373_v3  ;;  %v71_v10 = vld [vmem:[%s3679_s1 + $0x70] sm:$0xff]  ;;  %v2381_v20 = vpack.c.bf16 %v67_v7, %v65_v6  ;;  %v2549_v21 = vld [vmem:[%s3680_s0 + $0x38] sm:$0x1]  ;;  %v97_v26 = vsel %vm81_vm0, %v2535_v16, 0.0  ;;  %vm246_vm8 = vcmask 1047559  }
   0x5   :  { %v69_v9 = vld [vmem:[%s3679_s1 + $0x60] sm:$0xff]  ;;  %v2518_v12 = vld [vmem:[%s3680_s0 + $0x10] sm:$0xff]  ;;  %v82_v14 = vsel %vm81_vm0, %v2502_v8, 0.0  ;;  %2376 = vmatpush3.bf16.msra.mxu0 %v2373_v3  ;;  %v2559_v23 = vld [vmem:[%s3680_s0 + $0x48] sm:$0xff]  ;;  %v101_v37 = vsel %vm87_vm1, %v2549_v21, 0.0  ;;  %vm3725_vm9 = vcmask 1041408  }
   0x6   :  { %v2530_v15 = vld [vmem:[%s3680_s0 + $0x20] sm:$0xff]  ;;  %v2540_v17 = vld [vmem:[%s3680_s0 + $0x30] sm:$0xff]  ;;  %v85_v19 = vsel %vm81_vm0, %v2518_v12, 0.0  ;;  %2378 = vmatprep.subr.bf16.mxu0 %v2377_v5  ;;  %v84_v24 = vadd.f32 %v83_v18, %v82_v14  ;;  %v2573_v28 = vld [vmem:[%s3680_s0 + $0x58] sm:$0x1]  ;;  %v110_v39 = vsel %vm81_vm0, %v2559_v23, 0.0  ;;  %v2385_v40 = vpack.c.bf16 %v71_v10, %v69_v9 }
   0x7   :  { %v2554_v22 = vld [vmem:[%s3680_s0 + $0x40] sm:$0xff]  ;;  %v96_v25 = vsel %vm81_vm0, %v2530_v15, 0.0  ;;  %v2568_v27 = vld [vmem:[%s3680_s0 + $0x50] sm:$0xff]  ;;  %v99_v32 = vsel %vm81_vm0, %v2540_v17, 0.0  ;;  %v2587_v34 = vld [vmem:[%s3680_s0 + $0x68] sm:$0xff]  ;;  %v114_v47 = vsel %vm87_vm1, %v2573_v28, 0.0 }
   0x8   :  { %v2578_v29 = vld [vmem:[%s3680_s0 + $0x60] sm:$0xff]  ;;  %v98_v31 = vadd.f32 %v97_v26, %v96_v25  ;;  %v2592_v35 = vld [vmem:[%s3680_s0 + $0x70] sm:$0xff]  ;;  %v86_v36 = vadd.f32 %v85_v19, %v84_v24  ;;  %v109_v38 = vsel %vm81_vm0, %v2554_v22, 0.0  ;;  %v2603_v41 = vld [vmem:[%s3680_s0 + $0x78] sm:$0x1]  ;;  %v112_v44 = vsel %vm81_vm0, %v2568_v27, 0.0 }
   0x9   :  { %2380 = vmatpush3.bf16.msra.mxu0 %v2377_v5  ;;  %v111_v43 = vadd.f32 %v110_v39, %v109_v38  ;;  %v2610_v45 = vld [vmem:[%s3680_s0 + $0x80] sm:$0xff]  ;;  %v122_v48 = vsel %vm81_vm0, %v2578_v29, 0.0  ;;  %v123_v49 = vsel %vm81_vm0, %v2587_v34, 0.0  ;;  %v2621_v50 = vld [vmem:[%s3680_s0 + $0x88] sm:$0xff]  ;;  %v2626_v51 = vld [vmem:[%s3680_s0 + $0x90] sm:$0xff]  ;;  %v125_v56 = vsel %vm81_vm0, %v2592_v35, 0.0 }
   0xa   :  { %v100_v42 = vadd.f32 %v99_v32, %v98_v31  ;;  %2382 = vmatprep.subr.bf16.mxu0 %v2381_v20  ;;  %v89_v46 = vadd.f32 %v88_v30, %v86_v36  ;;  %v2631_v52 = vld [vmem:[%s3680_s0 + $0x98] sm:$0x1]  ;;  %v124_v55 = vadd.f32 %v123_v49, %v122_v48  ;;  %v127_v58 = vsel %vm87_vm1, %v2603_v41, 0.0  ;;  %v2643_v60 = vld [vmem:[%s3680_s0 + $0xa0] sm:$0xff]  ;;  %v2648_v61 = vld [vmem:[%s3680_s0 + $0xa8] sm:$0xff] }
   0xb   :  { %v113_v54 = vadd.f32 %v112_v44, %v111_v43  ;;  %v2653_v62 = vld [vmem:[%s3680_s0 + $0xb0] sm:$0xff]  ;;  %v135_v2 = vsel %vm81_vm0, %v2610_v45, 0.0  ;;  %v136_v4 = vsel %vm81_vm0, %v2621_v50, 0.0  ;;  %v138_v5 = vsel %vm81_vm0, %v2626_v51, 0.0  ;;  %v2666_v7 = vld [vmem:[%s3680_s0 + $0xb8] sm:$0x1] }
   0xc   :  { %v102_v53 = vadd.f32 %v101_v37, %v100_v42  ;;  %v90_v57 = vrot.slane %v89_v46, 4  ;;  %v126_v1 = vadd.f32 %v125_v56, %v124_v55  ;;  %v140_v6 = vsel %vm87_vm1, %v2631_v52, 0.0  ;;  %v2671_v9 = vld [vmem:[%s3680_s0 + $0xc0] sm:$0xff]  ;;  %v2682_v30 = vld [vmem:[%s3680_s0 + $0xc8] sm:$0xff]  ;;  %v2687_v31 = vld [vmem:[%s3680_s0 + $0xd0] sm:$0xff] }
   0xd   :  { %2384 = vmatpush3.bf16.msra.mxu0 %v2381_v20  ;;  %v115_v0 = vadd.f32 %v114_v47, %v113_v54  ;;  %v137_v19 = vadd.f32 %v136_v4, %v135_v2  ;;  %v148_v24 = vsel %vm81_vm0, %v2643_v60, 0.0  ;;  %v149_v25 = vsel %vm81_vm0, %v2648_v61, 0.0  ;;  %v2696_v44 = vld [vmem:[%s3680_s0 + $0xd8] sm:$0x1] }
   0xe   :  { %v103_v63 = vrot.slane %v102_v53, 4  ;;  %2386 = vmatprep.subr.bf16.mxu0 %v2385_v40  ;;  %v91_v3 = vadd.f32 %v90_v57, %v89_v46  ;;  %v128_v18 = vadd.f32 %v127_v58, %v126_v1  ;;  %v151_v26 = vsel %vm81_vm0, %v2653_v62, 0.0  ;;  %v2705_v57 = vld [vmem:[%s3680_s0 + $0xe0] sm:$0xff]  ;;  %v2710_v58 = vld [vmem:[%s3680_s0 + $0xe8] sm:$0xff] }
   0xf   :  { %v116_v14 = vrot.slane %v115_v0, 4  ;;  %v139_v38 = vadd.f32 %v138_v5, %v137_v19  ;;  %v150_v42 = vadd.f32 %v149_v25, %v148_v24  ;;  %v153_v43 = vsel %vm87_vm1, %v2666_v7, 0.0 }
  0x10   :  { %v104_v10 = vadd.f32 %v103_v63, %v102_v53  ;;  %v92_v20 = vrot.slane %v91_v3, 2  ;;  %v129_v37 = vrot.slane %v128_v18, 4  ;;  %v162_v55 = vsel %vm81_vm0, %v2682_v30, 0.0 }
  0x11   :  { %2388 = vmatpush3.bf16.msra.mxu0 %v2385_v40  ;;  %v117_v36 = vadd.f32 %v116_v14, %v115_v0  ;;  %v161_v40 = vsel %vm81_vm0, %v2671_v9, 0.0  ;;  %v141_v49 = vadd.f32 %v140_v6, %v139_v38  ;;  %v152_v54 = vadd.f32 %v151_v26, %v150_v42  ;;  %v2722_v14 = vld [vmem:[%s3680_s0 + $0xf8] sm:$0x1] }
  0x12   :  { %v105_v32 = vrot.slane %v104_v10, 2  ;;  %v93_v39 = vadd.f32 %v92_v20, %v91_v3  ;;  %v130_v48 = vadd.f32 %v129_v37, %v128_v18  ;;  %v164_v56 = vsel %vm81_vm0, %v2687_v31, 0.0 }
  0x13   :  { %v118_v47 = vrot.slane %v117_v36, 2  ;;  %v142_v2 = vrot.slane %v141_v49, 4  ;;  %v154_v4 = vadd.f32 %v153_v43, %v152_v54  ;;  %v163_v5 = vadd.f32 %v162_v55, %v161_v40 }
  0x14   :  { %v106_v46 = vadd.f32 %v105_v32, %v104_v10  ;;  %v94_v53 = vrot.slane %v93_v39, 1  ;;  %v131_v1 = vrot.slane %v130_v48, 2  ;;  %v166_v6 = vsel %vm87_vm1, %v2696_v44, 0.0  ;;  %v2717_v10 = vld [vmem:[%s3680_s0 + $0xf0] sm:$0xff] }
  0x15   :  { %v119_v0 = vadd.f32 %v118_v47, %v117_v36  ;;  %3728 = vst [vmem:[#allocation2_spill] sm:$0xff] %v2717_v10  ;;  %v143_v24 = vadd.f32 %v142_v2, %v141_v49  ;;  %v155_v25 = vrot.slane %v154_v4, 4  ;;  %v165_v26 = vadd.f32 %v164_v56, %v163_v5  ;;  %v2740_v56 = vld [vmem:[%s3680_s0 + $0x108] sm:$0xff] }
  0x16   :  { %v107_v63 = vrot.slane %v106_v46, 1  ;;  %v95_v3 = vadd.f32 %v94_v53, %v93_v39  ;;  %v132_v20 = vadd.f32 %v131_v1, %v130_v48  ;;  %v174_v32 = vsel %vm81_vm0, %v2705_v57, 0.0  ;;  %v2735_v48 = vld [vmem:[%s3680_s0 + $0x100] sm:$0xff] }
  0x17   :  { %v120_v19 = vrot.slane %v119_v0, 1  ;;  %v175_v36 = vsel %vm81_vm0, %v2710_v58, 0.0  ;;  %v144_v39 = vrot.slane %v143_v24, 2  ;;  %v156_v43 = vadd.f32 %v155_v25, %v154_v4 }
  0x18   :  { %v108_v18 = vadd.f32 %v107_v63, %v106_v46  ;;  %v133_v38 = vrot.slane %v132_v20, 1  ;;  %v176_v42 = vadd.f32 %v175_v36, %v174_v32  ;;  %v167_v40 = vadd.f32 %v166_v6, %v165_v26 }
  0x19   :  { %v121_v37 = vadd.f32 %v120_v19, %v119_v0  ;;  %v177_v46 = vsel %vm81_vm0, %v2717_v10, 0.0  ;;  %v179_v47 = vsel %vm87_vm1, %v2722_v14, 0.0  ;;  %v145_v53 = vadd.f32 %v144_v39, %v143_v24  ;;  %v2745_v19 = vld [vmem:[%s3680_s0 + $0x110] sm:$0xff]  ;;  %v2766_v39 = vld [vmem:[%s3680_s0 + $0x128] sm:$0xff] }
  0x1a   :  { %v134_v49 = vadd.f32 %v133_v38, %v132_v20  ;;  %v178_v54 = vadd.f32 %v177_v46, %v176_v42  ;;  %v214_v55 = vmul.f32 0.04, %v95_v3  ;;  %v157_v63 = vrot.slane %v156_v43, 2  ;;  %v2761_v38 = vld [vmem:[%s3680_s0 + $0x120] sm:$0xff] }
  0x1b   :  { %v168_v0 = vrot.slane %v167_v40, 4  ;;  %v215_v1 = vmul.f32 0.04, %v108_v18  ;;  %v216_v2 = vmul.f32 0.04, %v121_v37  ;;  %v146_v4 = vrot.slane %v145_v53, 1 }
  0x1c   :  { %v180_v5 = vadd.f32 %v179_v47, %v178_v54  ;;  %v217_v6 = vmul.f32 0.04, %v134_v49  ;;  %v187_v3 = vsel %vm81_vm0, %v2735_v48, 0.0  ;;  %v158_v20 = vadd.f32 %v157_v63, %v156_v43  ;;  %v2753_v18 = vld [vmem:[%s3680_s0 + $0x118] sm:$0x1]  ;;  %v2774_v54 = vld [vmem:[%s3680_s0 + $0x130] sm:$0xff] }
  0x1d   :  { %v169_v24 = vadd.f32 %v168_v0, %v167_v40  ;;  %v235_v25 = vsel %vm234_vm2, %v215_v1, %v214_v55  ;;  %v188_v26 = vsel %vm81_vm0, %v2740_v56, 0.0  ;;  %v147_v32 = vadd.f32 %v146_v4, %v145_v53  ;;  %v2779_v55 = vld [vmem:[%s3680_s0 + $0x138] sm:$0x1] }
  0x1e   :  { %v181_v36 = vrot.slane %v180_v5, 4  ;;  %v237_v37 = vsel %vm236_vm3, %v216_v2, %v235_v25  ;;  %v189_v42 = vadd.f32 %v188_v26, %v187_v3  ;;  %v159_v43 = vrot.slane %v158_v20, 1 }
  0x1f   :  { %v170_v40 = vrot.slane %v169_v24, 2  ;;  %v239_v46 = vsel %vm3727_vm4, %v217_v6, %v237_v37  ;;  %v190_v47 = vsel %vm81_vm0, %v2745_v19, 0.0  ;;  %v218_v53 = vmul.f32 0.04, %v147_v32 }
  0x20   :  { %v182_v49 = vadd.f32 %v181_v36, %v180_v5  ;;  %v191_v63 = vadd.f32 %v190_v47, %v189_v42  ;;  %v192_v0 = vsel %vm87_vm1, %v2753_v18, 0.0  ;;  %v160_v1 = vadd.f32 %v159_v43, %v158_v20 }
  0x21   :  { %v171_v2 = vadd.f32 %v170_v40, %v169_v24  ;;  %v200_v4 = vsel %vm81_vm0, %v2761_v38, 0.0  ;;  %v201_v5 = vsel %vm81_vm0, %v2766_v39, 0.0  ;;  %v241_v3 = vsel %vm3726_vm5, %v218_v53, %v239_v46  ;;  %v2795_v24 = vld [vmem:[%s3681_s2] sm:$0xff] }
  0x22   :  { %v183_v6 = vrot.slane %v182_v49, 2  ;;  %v193_v25 = vadd.f32 %v192_v0, %v191_v63  ;;  %v202_v26 = vadd.f32 %v201_v5, %v200_v4  ;;  %v219_v36 = vmul.f32 0.04, %v160_v1 }
  0x23   :  { %v172_v32 = vrot.slane %v171_v2, 1  ;;  %v203_v37 = vsel %vm81_vm0, %v2774_v54, 0.0  ;;  %v205_v20 = vsel %vm87_vm1, %v2779_v55, 0.0  ;;  %v2798_v46 = vsub.s32 1, %v2638_v59 }
  0x24   :  { %v184_v42 = vadd.f32 %v183_v6, %v182_v49  ;;  %v194_v43 = vrot.slane %v193_v25, 4  ;;  %v204_v40 = vadd.f32 %v203_v37, %v202_v26  ;;  %v243_v53 = vsel %vm242_vm6, %v219_v36, %v241_v3 }
  0x25   :  { %3729 = vst [vmem:[#allocation3_spill] sm:$0xff] %v2798_v46  ;;  %v173_v47 = vadd.f32 %v172_v32, %v171_v2  ;;  %v3686_v63 = vsub.s32 5, %v2638_v59  ;;  %v405_v5 = vrot.slane %v2795_v24, %v2798_v46  ;;  %vm3724_vm10 = vcmask 1043968  }
  0x26   :  { %v185_v0 = vrot.slane %v184_v42, 1  ;;  %v195_v1 = vadd.f32 %v194_v43, %v193_v25  ;;  %v206_v4 = vadd.f32 %v205_v20, %v204_v40  ;;  %vm3721_vm11 = vcmask 521216  }
  0x27   :  { %v220_v33 = vmul.f32 0.04, %v173_v47  ;;  %407 = vrot.lane.b32.xlu0 %v405_v5, %s2451_s8  ;;  %v415_v2 = vrot.slane %v2795_v24, %v3686_v63  ;;  %vm433_vm12 = vcmask 1045504   ;;  %vm1386_vm13 = vcmask 1042432  }
  0x28   :  { %v186_v10 = vadd.f32 %v185_v0, %v184_v42  ;;  %v196_v49 = vrot.slane %v195_v1, 2  ;;  %v207_v6 = vrot.slane %v206_v4, 4  ;;  %vm929_vm14 = vcmask 130112  }
  0x29   :  { %v245_v3 = vsel %vm244_vm7, %v220_v33, %v243_v53  ;;  %vm1176_vm15 = vcmask 335112  }
  0x2a   :  { %v221_v26 = vmul.f32 0.04, %v186_v10  ;;  %v197_v25 = vadd.f32 %v196_v49, %v195_v1  ;;  %v208_v32 = vadd.f32 %v207_v6, %v206_v4 }
  0x2b   :  { %417 = vrot.lane.b32.xlu0 %v415_v2, %s2451_s8 }
  0x2c   :  { %v247_v36 = vsel %vm246_vm8, %v221_v26, %v245_v3  ;;  %v198_v37 = vrot.slane %v197_v25, 1  ;;  %v209_v20 = vrot.slane %v208_v32, 2 }
  0x2d   :  { %2334 = vmatprep.mubr.msk.f32.mxu0 %vm81_vm0, %v247_v36 }
  0x2e   :  { %v199_v42 = vadd.f32 %v198_v37, %v197_v25  ;;  %v210_v43 = vadd.f32 %v209_v20, %v208_v32 }
  0x30   :  { %v211_v40 = vrot.slane %v210_v43, 1  ;;  %v222_v0 = vmul.f32 0.04, %v199_v42 }
  0x32   :  { %v212_v47 = vadd.f32 %v211_v40, %v210_v43 }
  0x34   :  { %v223_v5 = vmul.f32 0.04, %v212_v47 }
  0x36   :  { %v248_v33 = vsel %vm234_vm2, %v223_v5, %v222_v0 }
  0x37   :  { %2335 = vmatmul.mubr.msk.f32.vlgmr.msra.gmra.mrb[0].mxu0 %vm81_vm0, %v248_v33 }
 0x10a   :  { %v2336_v10 = vpop.f32.mrb[0].mxu0 }
 0x10b   :  { %v367_v53 = vrot.slane %v2336_v10, 6  ;;  %v319_v1 = vpop.f32.mrb[1].mxu0 }
 0x10c   :  { %v366_v4 = vrot.slane %v319_v1, 6 }
 0x10e   :  { %v368_v49 = vsel %vm3725_vm9, %v366_v4, %v367_v53 }
 0x10f   :  { %v371_v6 = vsel %vm3724_vm10, %v368_v49, 0.0 }
 0x110   :  { %v372_v2 = vrot.slane %v371_v6, 4 }
 0x112   :  { %v373_v3 = vadd.f32 %v372_v2, %v371_v6 }
 0x114   :  { %v374_v26 = vrot.slane %v373_v3, 2 }
 0x116   :  { %v375_v25 = vadd.f32 %v374_v26, %v373_v3 }
 0x118   :  { %v376_v32 = vrot.slane %v375_v25, 1 }
 0x11a   :  { %v377_v36 = vadd.f32 %v376_v32, %v375_v25  ;;  %v408_v25 = vpop.permute.xlu0 %407 }
 0x11c   :  { %v379_v37 = vmul.f32 0.25, %v377_v36 }
 0x11e   :  { %v380_v20 = vsub.f32 %v319_v1, %v379_v37  ;;  %v381_v42 = vsub.f32 %v2336_v10, %v379_v37  ;;  %v418_v37 = vpop.permute.xlu0 %417 }
 0x120   :  { %v382_v43 = vmul.f32 %v380_v20, %v380_v20  ;;  %v383_v40 = vmul.f32 %v381_v42, %v381_v42 }
 0x122   :  { %v386_v47 = vrot.slane %v382_v43, 6  ;;  %v387_v0 = vrot.slane %v383_v40, 6 }
 0x124   :  { %v388_v5 = vsel %vm3725_vm9, %v386_v47, %v387_v0  ;;  %vm1190_vm9 = vcmask 466312  }
 0x125   :  { %v390_v33 = vsel %vm3724_vm10, %v388_v5, 0.0  ;;  %vm1183_vm10 = vcmask 400712  }
 0x126   :  { %v391_v53 = vrot.slane %v390_v33, 4 }
 0x128   :  { %v392_v4 = vadd.f32 %v391_v53, %v390_v33  ;;  %v329_v53 = vsel %vm3721_vm11, %v319_v1, 0.0 }
 0x12a   :  { %v393_v49 = vrot.slane %v392_v4, 2 }
 0x12c   :  { %v394_v63 = vadd.f32 %v393_v49, %v392_v4 }
 0x12e   :  { %v395_v6 = vrot.slane %v394_v63, 1 }
 0x130   :  { %v396_v2 = vadd.f32 %v395_v6, %v394_v63 }
 0x132   :  { %v397_v3 = vmul.f32 0.25, %v396_v2 }
 0x134   :  { %v398_v26 = vadd.f32 1e-05, %v397_v3 }
 0x136   :  { %2422 = vrsqrt.f32 %v398_v26 }
 0x140   :  { %v2423_v32 = vpop.eup %2422 }
 0x141   :  { %v400_v10 = vmul.f32 %v2423_v32, %v380_v20  ;;  %v401_v36 = vmul.f32 %v2423_v32, %v381_v42  ;;  %v330_v20 = vrot.slane %v329_v53, 4 }
 0x143   :  { %v410_v43 = vmul.f32 %v408_v25, %v400_v10  ;;  %v411_v40 = vmul.f32 %v408_v25, %v401_v36  ;;  %v331_v42 = vadd.f32 %v330_v20, %v329_v53  ;;  %v3689_v53 = vsub.s32 4, %v2638_v59 }
 0x145   :  { %v420_v46 = vadd.f32 %v418_v37, %v410_v43  ;;  %v421_v47 = vadd.f32 %v418_v37, %v411_v40  ;;  %v332_v4 = vrot.slane %v331_v42, 2 }
 0x147   :  { %2424 = vtanh.f32 %v420_v46  ;;  %v333_v49 = vadd.f32 %v332_v4, %v331_v42  ;;  %v359_v42 = vrot.slane %v2795_v24, %v3689_v53  ;;  %v77_v53 = vld [vmem:[%s3682_s3 + $0x18] sm:$0xff] }
 0x148   :  { %2426 = vtanh.f32 %v421_v47 }
 0x149   :  { %v334_v6 = vrot.slane %v333_v49, 1 }
 0x14b   :  { %v335_v2 = vadd.f32 %v334_v6, %v333_v49  ;;  %v2452_v49 = vmov 1966171168  }
 0x14c   :  { %v438_v6 = vunpack.c.l.s4 %v2452_v49 }
 0x14d   :  { %v337_v3 = vmul.f32 0.16666667, %v335_v2 }
 0x14e   :  { %v439_v2 = vunpack.c.0.s8 %v438_v6 }
 0x14f   :  { %v338_v46 = vsub.f32 %v319_v1, %v337_v3 }
 0x151   :  { %v2425_v0 = vpop.eup %2424  ;;  %v339_v26 = vmul.f32 %v338_v46, %v338_v46 }
 0x152   :  { %v424_v5 = vadd.f32 1.0, %v2425_v0  ;;  %v2427_v33 = vpop.eup %2426 }
 0x153   :  { %v425_v63 = vadd.f32 1.0, %v2427_v33  ;;  %v340_v25 = vsel %vm3721_vm11, %v339_v26, 0.0  ;;  %vm943_vm11 = vcmask 261312  }
 0x154   :  { %428 = vrot.lane.b32.xlu1 %v424_v5, %s2451_s8  ;;  %v341_v32 = vrot.slane %v340_v25, 4  ;;  %v2823_v5 = vsub.s32 0, %v2638_v59 }
 0x156   :  { %v342_v10 = vadd.f32 %v341_v32, %v340_v25  ;;  %v354_v1 = vrot.slane %v2795_v24, %v2823_v5 }
 0x158   :  { %430 = vrot.lane.b32.xlu1 %v425_v63, %s2451_s8  ;;  %v343_v36 = vrot.slane %v342_v10, 2 }
 0x15a   :  { %v344_v37 = vadd.f32 %v343_v36, %v342_v10 }
 0x15c   :  { %v345_v43 = vrot.slane %v344_v37, 1 }
 0x15e   :  { %v346_v40 = vadd.f32 %v345_v43, %v344_v37 }
 0x160   :  { %v347_v47 = vmul.f32 0.16666667, %v346_v40 }
 0x162   :  { %v348_v0 = vadd.f32 1e-05, %v347_v47 }
 0x164   :  { %2428 = vrsqrt.f32 %v348_v0 }
 0x16e   :  { %v2429_v33 = vpop.eup %2428 }
 0x16f   :  { %v350_v63 = vmul.f32 %v2429_v33, %v338_v46  ;;  %v2832_v46 = vsub.s32 %v439_v2, %v2638_v59 }
 0x171   :  { %v355_v20 = vmul.f32 %v354_v1, %v350_v63  ;;  %3730 = vst [vmem:[#allocation4_spill] sm:$0xff] %v2832_v46 }
 0x173   :  { %v360_v4 = vadd.f32 %v359_v42, %v355_v20 }
 0x175   :  { %2430 = vtanh.f32 %v360_v4 }
 0x17f   :  { %v2431_v26 = vpop.eup %2430 }
 0x180   :  { %v362_v25 = vadd.f32 1.0, %v2431_v26 }
 0x1c6   :  { %v429_v3 = vpop.permute.xlu1 %428 }
 0x1c7   :  { %v2836_v36 = vsel %vm433_vm12, %v362_v25, %v429_v3 }
 0x1c8   :  { %v443_v37 = vrot.slane %v2836_v36, %v2832_v46 }
 0x1ca   :  { %v431_v32 = vpop.permute.xlu1 %430  ;;  %v459_v0 = vrot.slane %v443_v37, %v2832_v46 }
 0x1cb   :  { %v491_v10 = vrot.slane %v431_v32, %v2832_v46 }
 0x1cc   :  { %v510_v20 = vrot.slane %v459_v0, %v2823_v5 }
 0x1cd   :  { %v499_v24 = vrot.slane %v491_v10, %v2832_v46  ;;  %v492_v6 = vcombine.high %v491_v10, %v491_v10 }
 0x1ce   :  { %v2869_v49 = vmul.f32 %v510_v20, %v2513_v11  ;;  %v2876_v26 = vmul.f32 %v510_v20, %v2518_v12  ;;  %v2879_v25 = vmul.f32 %v510_v20, %v2502_v8 }
 0x1cf   :  { %v542_v43 = vrot.slane %v499_v24, %v2823_v5  ;;  %v506_v11 = vrot.slane %v492_v6, %v2832_v46  ;;  %v2892_v24 = vmul.f32 %v510_v20, %v2523_v13 }
 0x1d0   :  { %v720_v3 = vsel %vm81_vm0, %v2869_v49, 0.0  ;;  %v717_v32 = vsel %vm81_vm0, %v2879_v25, 0.0  ;;  %v600_v12 = vsel %vm81_vm0, %v2869_v49, -inf  ;;  %v597_v8 = vsel %vm81_vm0, %v2879_v25, -inf }
 0x1d1   :  { %v2843_v40 = vmul.f32 %v542_v43, %v2740_v56  ;;  %v2846_v47 = vmul.f32 %v542_v43, %v2735_v48  ;;  %v2854_v1 = vmul.f32 %v542_v43, %v2745_v19  ;;  %v2866_v19 = vmul.f32 %v542_v43, %v2753_v18  ;;  %3732 = vst [vmem:[#allocation6_spill] sm:$0xff] %v2892_v24 }
 0x1d2   :  { %v723_v18 = vsel %vm81_vm0, %v2876_v26, 0.0  ;;  %v546_v10 = vrot.slane %v506_v11, %v2823_v5  ;;  %v603_v43 = vsel %vm81_vm0, %v2876_v26, -inf }
 0x1d3   :  { %v816_v33 = vsel %vm81_vm0, %v2843_v40, 0.0  ;;  %v813_v63 = vsel %vm81_vm0, %v2846_v47, 0.0  ;;  %v819_v56 = vsel %vm81_vm0, %v2854_v1, 0.0  ;;  %v696_v48 = vsel %vm81_vm0, %v2843_v40, -inf  ;;  %3731 = vst [vmem:[#allocation5_spill] sm:$0xff] %v2866_v19 }
 0x1d4   :  { %817 = vadd.xlane.f32.xlu0 %v816_v33  ;;  %814 = vadd.xlane.f32.xlu1 %v813_v63  ;;  %v699_v42 = vsel %vm81_vm0, %v2854_v1, -inf  ;;  %v693_v4 = vsel %vm81_vm0, %v2846_v47, -inf  ;;  %v822_v2 = vsel %vm87_vm1, %v2866_v19, 0.0  ;;  %v726_v33 = vsel %vm87_vm1, %v2892_v24, 0.0 }
 0x1d5   :  { %v2899_v63 = vmul.f32 %v546_v10, %v2761_v38  ;;  %v2906_v20 = vmul.f32 %v546_v10, %v2766_v39 }
 0x1d7   :  { %v825_v13 = vsel %vm81_vm0, %v2899_v63, 0.0 }
 0x1d8   :  { %820 = vadd.xlane.f32.xlu0 %v819_v56  ;;  %697 = vmax.xlane.f32.xlu1 %v696_v48  ;;  %v451_v56 = vcombine.high %v443_v37, %v443_v37  ;;  %v606_v48 = vsel %vm87_vm1, %v2892_v24, -inf  ;;  %v828_v37 = vsel %vm81_vm0, %v2906_v20, 0.0 }
 0x1da   :  { %v2912_v38 = vrot.slane %v451_v56, %v2832_v46 }
 0x1dc   :  { %700 = vmax.xlane.f32.xlu1 %v699_v42  ;;  %694 = vmax.xlane.f32.xlu0 %v693_v4  ;;  %v2909_v42 = vmul.f32 %v546_v10, %v2774_v54  ;;  %v481_v4 = vcombine.high %v459_v0, %v459_v0  ;;  %v514_v39 = vrot.slane %v2912_v38, %v2823_v5 }
 0x1dd   :  { %v2926_v0 = vmul.f32 %v546_v10, %v2779_v55  ;;  %v436_v55 = vcombine.high %v2836_v36, %v2836_v36 }
 0x1de   :  { %3733 = vst [vmem:[#allocation7_spill] sm:$0xff] %v2909_v42  ;;  %v831_v6 = vsel %vm81_vm0, %v2909_v42, 0.0  ;;  %v518_v54 = vrot.slane %v481_v4, %v2823_v5  ;;  %v711_v11 = vsel %vm81_vm0, %v2909_v42, -inf  ;;  %v2953_v36 = vmul.f32 %v514_v39, %v2540_v17 }
 0x1df   :  { %3734 = vst [vmem:[#allocation8_spill] sm:$0xff] %v2926_v0 }
 0x1e0   :  { %823 = vadd.xlane.f32.xlu0 %v822_v2  ;;  %721 = vadd.xlane.f32.xlu1 %v720_v3  ;;  %v705_v2 = vsel %vm81_vm0, %v2899_v63, -inf  ;;  %v708_v3 = vsel %vm81_vm0, %v2906_v20, -inf  ;;  %3737 = vst [vmem:[#allocation11_spill] sm:$0xff] %v2953_v36  ;;  %v2956_v56 = vmul.f32 %v518_v54, %v2568_v27  ;;  %v2966_v4 = vmul.f32 %v518_v54, %v2559_v23 }
 0x1e2   :  { %3738 = vst [vmem:[#allocation12_spill] sm:$0xff] %v2956_v56  ;;  %3739 = vst [vmem:[#allocation13_spill] sm:$0xff] %v2966_v4  ;;  %v744_v27 = vsel %vm81_vm0, %v2966_v4, 0.0  ;;  %v624_v23 = vsel %vm81_vm0, %v2966_v4, -inf }
 0x1e4   :  { %724 = vadd.xlane.f32.xlu1 %v723_v18  ;;  %718 = vadd.xlane.f32.xlu0 %v717_v32  ;;  %v834_v18 = vsel %vm87_vm1, %v2926_v0, 0.0  ;;  %v2933_v32 = vmul.f32 %v518_v54, %v2554_v22  ;;  %v450_v22 = vrot.slane %v436_v55, %v2832_v46 }
 0x1e6   :  { %3735 = vst [vmem:[#allocation9_spill] sm:$0xff] %v2933_v32  ;;  %v741_v10 = vsel %vm81_vm0, %v2933_v32, 0.0  ;;  %v621_v55 = vsel %vm81_vm0, %v2933_v32, -inf }
 0x1e8   :  { %601 = vmax.xlane.f32.xlu0 %v600_v12  ;;  %598 = vmax.xlane.f32.xlu1 %v597_v8  ;;  %v2936_v12 = vmul.f32 %v514_v39, %v2530_v15 }
 0x1ea   :  { %3736 = vst [vmem:[#allocation10_spill] sm:$0xff] %v2936_v12  ;;  %v729_v8 = vsel %vm81_vm0, %v2936_v12, 0.0 }
 0x1ec   :  { %604 = vmax.xlane.f32.xlu0 %v603_v43  ;;  %727 = vadd.xlane.f32.xlu1 %v726_v33  ;;  %v2945_v43 = vmul.f32 %v514_v39, %v2535_v16  ;;  %v609_v33 = vsel %vm81_vm0, %v2936_v12, -inf  ;;  %v2959_v16 = vrot.slane %v450_v22, %v2832_v46 }
 0x1ee   :  { %v732_v15 = vsel %vm81_vm0, %v2945_v43, 0.0  ;;  %v526_v17 = vrot.slane %v2959_v16, %v2823_v5 }
 0x1f0   :  { %607 = vmax.xlane.f32.xlu0 %v606_v48  ;;  %826 = vadd.xlane.f32.xlu1 %v825_v13  ;;  %v735_v48 = vsel %vm81_vm0, %v2953_v36, 0.0  ;;  %v747_v13 = vsel %vm81_vm0, %v2956_v56, 0.0 }
 0x1f4   :  { %829 = vadd.xlane.f32.xlu0 %v828_v37  ;;  %832 = vadd.xlane.f32.xlu1 %v831_v6  ;;  %v615_v37 = vsel %vm81_vm0, %v2953_v36, -inf  ;;  %v612_v6 = vsel %vm81_vm0, %v2945_v43, -inf }
 0x1f8   :  { %706 = vmax.xlane.f32.xlu0 %v705_v2  ;;  %709 = vmax.xlane.f32.xlu1 %v708_v3  ;;  %v2979_v2 = vmul.f32 %v514_v39, %v2549_v21  ;;  %v2982_v3 = vmul.f32 %v526_v17, %v2621_v50  ;;  %v2993_v39 = vmul.f32 %v518_v54, %v2573_v28 }
 0x1fa   :  { %3740 = vst [vmem:[#allocation14_spill] sm:$0xff] %v2979_v2  ;;  %3741 = vst [vmem:[#allocation15_spill] sm:$0xff] %v2982_v3  ;;  %v618_v21 = vsel %vm87_vm1, %v2979_v2, -inf  ;;  %v750_v50 = vsel %vm87_vm1, %v2993_v39, 0.0 }
 0x1fb   :  { %3742 = vst [vmem:[#allocation16_spill] sm:$0xff] %v2993_v39 }
 0x1fc   :  { %712 = vmax.xlane.f32.xlu0 %v711_v11  ;;  %835 = vadd.xlane.f32.xlu1 %v834_v18  ;;  %v738_v11 = vsel %vm87_vm1, %v2979_v2, 0.0  ;;  %v768_v18 = vsel %vm81_vm0, %v2982_v3, 0.0 }
 0x200   :  { %742 = vadd.xlane.f32.xlu1 %v741_v10  ;;  %730 = vadd.xlane.f32.xlu0 %v729_v8  ;;  %v630_v10 = vsel %vm87_vm1, %v2993_v39, -inf  ;;  %v3000_v8 = vmul.f32 %v526_v17, %v2610_v45  ;;  %v627_v45 = vsel %vm81_vm0, %v2956_v56, -inf }
 0x202   :  { %3743 = vst [vmem:[#allocation17_spill] sm:$0xff] %v3000_v8  ;;  %v765_v28 = vsel %vm81_vm0, %v3000_v8, 0.0  ;;  %v645_v54 = vsel %vm81_vm0, %v3000_v8, -inf }
 0x204   :  { %733 = vadd.xlane.f32.xlu0 %v732_v15  ;;  %610 = vmax.xlane.f32.xlu1 %v609_v33  ;;  %v483_v15 = vcombine.high %v2912_v38, %v2912_v38  ;;  %v3009_v33 = vmul.f32 %v526_v17, %v2631_v52  ;;  %v3017_v38 = vmul.f32 %v526_v17, %v2626_v51 }
 0x206   :  { %3744 = vst [vmem:[#allocation18_spill] sm:$0xff] %v3009_v33  ;;  %3745 = vst [vmem:[#allocation19_spill] sm:$0xff] %v3017_v38  ;;  %v654_v52 = vsel %vm87_vm1, %v3009_v33, -inf }
 0x208   :  { %736 = vadd.xlane.f32.xlu0 %v735_v48  ;;  %748 = vadd.xlane.f32.xlu1 %v747_v13  ;;  %v522_v48 = vrot.slane %v483_v15, %v2823_v5  ;;  %v774_v13 = vsel %vm87_vm1, %v3009_v33, 0.0 }
 0x20a   :  { %v3031_v17 = vmul.f32 %v522_v48, %v2592_v35 }
 0x20c   :  { %745 = vadd.xlane.f32.xlu0 %v744_v27  ;;  %616 = vmax.xlane.f32.xlu1 %v615_v37  ;;  %v771_v27 = vsel %vm81_vm0, %v3017_v38, 0.0  ;;  %v3024_v37 = vmul.f32 %v522_v48, %v2587_v34  ;;  %3747 = vst [vmem:[#allocation21_spill] sm:$0xff] %v3031_v17  ;;  %v651_v34 = vsel %vm81_vm0, %v3017_v38, -inf }
 0x20e   :  { %3746 = vst [vmem:[#allocation20_spill] sm:$0xff] %v3024_v37  ;;  %v756_v51 = vsel %vm81_vm0, %v3024_v37, 0.0  ;;  %v636_v15 = vsel %vm81_vm0, %v3024_v37, -inf }
 0x210   :  { %613 = vmax.xlane.f32.xlu0 %v612_v6  ;;  %625 = vmax.xlane.f32.xlu1 %v624_v23  ;;  %v452_v6 = vcombine.high %v450_v22, %v450_v22  ;;  %v648_v23 = vsel %vm81_vm0, %v2982_v3, -inf  ;;  %v3039_v22 = vmul.f32 %v522_v48, %v2578_v29 }
 0x212   :  { %3748 = vst [vmem:[#allocation22_spill] sm:$0xff] %v3039_v22 }
 0x214   :  { %739 = vadd.xlane.f32.xlu0 %v738_v11  ;;  %769 = vadd.xlane.f32.xlu1 %v768_v18  ;;  %v480_v11 = vrot.slane %v452_v6, %v2832_v46  ;;  %v759_v18 = vsel %vm81_vm0, %v3031_v17, 0.0 }
 0x216   :  { %v530_v35 = vrot.slane %v480_v11, %v2823_v5 }
 0x218   :  { %622 = vmax.xlane.f32.xlu0 %v621_v55  ;;  %619 = vmax.xlane.f32.xlu1 %v618_v21  ;;  %v482_v55 = vcombine.high %v2959_v16, %v2959_v16  ;;  %v753_v21 = vsel %vm81_vm0, %v3039_v22, 0.0 }
 0x21a   :  { %v534_v29 = vrot.slane %v482_v55, %v2823_v5 }
 0x21c   :  { %751 = vadd.xlane.f32.xlu0 %v750_v50  ;;  %631 = vmax.xlane.f32.xlu1 %v630_v10  ;;  %v633_v50 = vsel %vm81_vm0, %v3039_v22, -inf  ;;  %v3049_v10 = vmul.f32 %v522_v48, %v2603_v41 }
 0x21e   :  { %3749 = vst [vmem:[#allocation23_spill] sm:$0xff] %v3049_v10  ;;  %v762_v16 = vsel %vm87_vm1, %v3049_v10, 0.0 }
 0x220   :  { %766 = vadd.xlane.f32.xlu0 %v765_v28  ;;  %646 = vmax.xlane.f32.xlu1 %v645_v54  ;;  %v3057_v28 = vmul.f32 %v530_v35, %v2648_v61  ;;  %v3060_v54 = vmul.f32 %v530_v35, %v2643_v60  ;;  %v639_v61 = vsel %vm81_vm0, %v3031_v17, -inf }
 0x222   :  { %3750 = vst [vmem:[#allocation24_spill] sm:$0xff] %v3057_v28  ;;  %3751 = vst [vmem:[#allocation25_spill] sm:$0xff] %v3060_v54  ;;  %v780_v41 = vsel %vm81_vm0, %v3057_v28, 0.0  ;;  %v777_v48 = vsel %vm81_vm0, %v3060_v54, 0.0 }
 0x224   :  { %628 = vmax.xlane.f32.xlu0 %v627_v45  ;;  %775 = vadd.xlane.f32.xlu1 %v774_v13  ;;  %v3067_v45 = vmul.f32 %v534_v29, %v2671_v9  ;;  %v3074_v13 = vmul.f32 %v530_v35, %v2653_v62  ;;  %v642_v9 = vsel %vm87_vm1, %v3049_v10, -inf  ;;  %v657_v62 = vsel %vm81_vm0, %v3060_v54, -inf }
 0x226   :  { %3752 = vst [vmem:[#allocation26_spill] sm:$0xff] %v3067_v45  ;;  %v789_v60 = vsel %vm81_vm0, %v3067_v45, 0.0  ;;  %3753 = vst [vmem:[#allocation27_spill] sm:$0xff] %v3074_v13 }
 0x228   :  { %772 = vadd.xlane.f32.xlu0 %v771_v27  ;;  %655 = vmax.xlane.f32.xlu1 %v654_v52  ;;  %v783_v27 = vsel %vm81_vm0, %v3074_v13, 0.0  ;;  %v3081_v52 = vmul.f32 %v534_v29, %v2682_v30 }
 0x22a   :  { %3754 = vst [vmem:[#allocation28_spill] sm:$0xff] %v3081_v52  ;;  %v792_v6 = vsel %vm81_vm0, %v3081_v52, 0.0 }
 0x22c   :  { %649 = vmax.xlane.f32.xlu0 %v648_v23  ;;  %757 = vadd.xlane.f32.xlu1 %v756_v51  ;;  %v3088_v23 = vmul.f32 %v530_v35, %v2666_v7  ;;  %v660_v51 = vsel %vm81_vm0, %v3057_v28, -inf  ;;  %v669_v7 = vsel %vm81_vm0, %v3067_v45, -inf  ;;  %v3102_v35 = vmul.f32 %v534_v29, %v2696_v44 }
 0x22e   :  { %3755 = vst [vmem:[#allocation29_spill] sm:$0xff] %v3088_v23  ;;  %v786_v30 = vsel %vm87_vm1, %v3088_v23, 0.0  ;;  %3757 = vst [vmem:[#allocation31_spill] sm:$0xff] %v3102_v35 }
 0x230   :  { %652 = vmax.xlane.f32.xlu0 %v651_v34  ;;  %760 = vadd.xlane.f32.xlu1 %v759_v18  ;;  %v3095_v34 = vmul.f32 %v534_v29, %v2687_v31  ;;  %v484_v18 = vcombine.high %v480_v11, %v480_v11  ;;  %v663_v31 = vsel %vm81_vm0, %v3074_v13, -inf  ;;  %v672_v11 = vsel %vm81_vm0, %v3081_v52, -inf }
 0x232   :  { %3756 = vst [vmem:[#allocation30_spill] sm:$0xff] %v3095_v34  ;;  %v795_v55 = vsel %vm81_vm0, %v3095_v34, 0.0  ;;  %v675_v29 = vsel %vm81_vm0, %v3095_v34, -inf }
 0x234   :  { %754 = vadd.xlane.f32.xlu0 %v753_v21  ;;  %634 = vmax.xlane.f32.xlu1 %v633_v50  ;;  %v538_v21 = vrot.slane %v484_v18, %v2823_v5  ;;  %v798_v50 = vsel %vm87_vm1, %v3102_v35, 0.0 }
 0x236   :  { %v3114_v44 = vmul.f32 %v538_v21, %v2705_v57  ;;  %v3128_v57 = vmul.f32 %v538_v21, %v2722_v14 }
 0x238   :  { %637 = vmax.xlane.f32.xlu0 %v636_v15  ;;  %763 = vadd.xlane.f32.xlu1 %v762_v16  ;;  %v666_v15 = vsel %vm87_vm1, %v3088_v23, -inf  ;;  %3758 = vst [vmem:[#allocation32_spill] sm:$0xff] %v3114_v44  ;;  %v801_v16 = vsel %vm81_vm0, %v3114_v44, 0.0  ;;  %3760 = vst [vmem:[#allocation34_spill] sm:$0xff] %v3128_v57 }
 0x23c   :  { %781 = vadd.xlane.f32.xlu0 %v780_v41  ;;  %778 = vadd.xlane.f32.xlu1 %v777_v48  ;;  %v678_v41 = vsel %vm87_vm1, %v3102_v35, -inf  ;;  %v681_v48 = vsel %vm81_vm0, %v3114_v44, -inf }
 0x240   :  { %640 = vmax.xlane.f32.xlu0 %v639_v61  ;;  %790 = vadd.xlane.f32.xlu1 %v789_v60  ;;  %v3125_v61 = vmul.f32 %v538_v21, %v2710_v58 }
 0x242   :  { %3759 = vst [vmem:[#allocation33_spill] sm:$0xff] %v3125_v61 }
 0x244   :  { %784 = vadd.xlane.f32.xlu0 %v783_v27  ;;  %643 = vmax.xlane.f32.xlu1 %v642_v9  ;;  %v804_v9 = vsel %vm81_vm0, %v3125_v61, 0.0 }
 0x248   :  { %793 = vadd.xlane.f32.xlu0 %v792_v6  ;;  %658 = vmax.xlane.f32.xlu1 %v657_v62  ;;  %v810_v6 = vsel %vm87_vm1, %v3128_v57, 0.0  ;;  %v3761_v62 = vld [vmem:[#allocation2_spill] sm:$0xff] }
 0x24c   :  { %661 = vmax.xlane.f32.xlu0 %v660_v51  ;;  %787 = vadd.xlane.f32.xlu1 %v786_v30  ;;  %v3139_v51 = vmul.f32 %v538_v21, %v3761_v62  ;;  %v684_v21 = vsel %vm81_vm0, %v3125_v61, -inf }
 0x24e   :  { %3762 = vst [vmem:[#allocation2_spill] sm:$0xff] %v3139_v51  ;;  %v807_v30 = vsel %vm81_vm0, %v3139_v51, 0.0  ;;  %v687_v18 = vsel %vm81_vm0, %v3139_v51, -inf }
 0x250   :  { %796 = vadd.xlane.f32.xlu0 %v795_v55  ;;  %670 = vmax.xlane.f32.xlu1 %v669_v7 }
 0x254   :  { %664 = vmax.xlane.f32.xlu0 %v663_v31  ;;  %799 = vadd.xlane.f32.xlu1 %v798_v50  ;;  %v702_v31 = vsel %vm87_vm1, %v2866_v19, -inf }
 0x258   :  { %673 = vmax.xlane.f32.xlu0 %v672_v11  ;;  %667 = vmax.xlane.f32.xlu1 %v666_v15  ;;  %v690_v15 = vsel %vm87_vm1, %v3128_v57, -inf }
 0x25c   :  { %676 = vmax.xlane.f32.xlu0 %v675_v29  ;;  %802 = vadd.xlane.f32.xlu1 %v801_v16 }
 0x260   :  { %679 = vmax.xlane.f32.xlu0 %v678_v41  ;;  %682 = vmax.xlane.f32.xlu1 %v681_v48  ;;  %v714_v41 = vsel %vm87_vm1, %v2926_v0, -inf }
 0x261   :  { %v3130_v60 = vpop.xlane.xlu0 %817  ;;  %v3132_v27 = vpop.xlane.xlu1 %814 }
 0x264   :  { %805 = vadd.xlane.f32.xlu0 %v804_v9  ;;  %811 = vadd.xlane.f32.xlu1 %v810_v6 }
 0x265   :  { %v3141_v58 = vpop.xlane.xlu0 %820  ;;  %v3143_v14 = vpop.xlane.xlu1 %697 }
 0x268   :  { %808 = vadd.xlane.f32.xlu0 %v807_v30  ;;  %688 = vmax.xlane.f32.xlu1 %v687_v18 }
 0x269   :  { %v3149_v55 = vpop.xlane.xlu1 %700  ;;  %v3151_v7 = vpop.xlane.xlu0 %694 }
 0x26c   :  { %685 = vmax.xlane.f32.xlu0 %v684_v21  ;;  %703 = vmax.xlane.f32.xlu1 %v702_v31  ;;  %v74_v21 = vld [vmem:[%s3682_s3] sm:$0xff]  ;;  %v75_v31 = vld [vmem:[%s3682_s3 + $0x8] sm:$0xff] }
 0x26d   :  { %v3157_v50 = vpop.xlane.xlu0 %823  ;;  %v3159_v11 = vpop.xlane.xlu1 %721 }
 0x270   :  { %691 = vmax.xlane.f32.xlu0 %v690_v15  ;;  %v2389_v15 = vpack.c.bf16 %v75_v31, %v74_v21  ;;  %v78_v21 = vld [vmem:[%s3682_s3 + $0x20] sm:$0xff]  ;;  %v79_v31 = vld [vmem:[%s3682_s3 + $0x28] sm:$0xff] }
 0x271   :  { %v3163_v29 = vpop.xlane.xlu1 %724  ;;  %v3165_v16 = vpop.xlane.xlu0 %718  ;;  %v2397_v34 = vpack.c.bf16 %v79_v31, %v78_v21  ;;  %v3763_v21 = vlaneseq }
 0x272   :  { %2390 = vmatprep.subr.bf16.mxu1 %v2389_v15 }
 0x273   :  { %2392 = vmatpush3.bf16.msra.mxu1 %v2389_v15  ;;  %v919_v31 = vand.u32 127, %v3763_v21 }
 0x274   :  { %715 = vmax.xlane.f32.xlu0 %v714_v41  ;;  %v76_v41 = vld [vmem:[%s3682_s3 + $0x10] sm:$0xff] }
 0x275   :  { %v3169_v48 = vpop.xlane.xlu0 %601  ;;  %v3171_v9 = vpop.xlane.xlu1 %598  ;;  %v2393_v57 = vpack.c.bf16 %v77_v53, %v76_v41  ;;  %v80_v53 = vld [vmem:[%s3682_s3 + $0x30] sm:$0x7]  ;;  %v924_v42 = vadd.s32 4294967288, %v919_v31  ;;  %v931_v13 = vadd.s32 4294967280, %v919_v31  ;;  %v3219_v28 = vsub.s32 %v919_v31, %v2638_v59  ;;  %s2453_s3 = smov 103  }
 0x276   :  { %v1166_v8 = vadd.s32 4294967271, %v919_v31  ;;  %v1178_v3 = vadd.s32 4294967255, %v919_v31  ;;  %v1185_v39 = vadd.s32 4294967247, %v919_v31  ;;  %v938_v22 = vadd.s32 4294967272, %v919_v31 }
 0x277   :  { %2394 = vmatprep.subr.bf16.mxu1 %v2393_v57  ;;  %v3216_v54 = vsub.s32 %v924_v42, %v2638_v59  ;;  %v3222_v38 = vsub.s32 %v931_v13, %v2638_v59  ;;  %v838_v13 = vmul.f32 0.015625, %v3165_v16 }
 0x278   :  { %2396 = vmatpush3.bf16.msra.mxu1 %v2393_v57 }
 0x279   :  { %v3173_v6 = vpop.xlane.xlu0 %604  ;;  %v3175_v62 = vpop.xlane.xlu1 %727  ;;  %2398 = vmatprep.subr.bf16.mxu1 %v2397_v34 }
 0x27c   :  { %2400 = vmatpush3.bf16.msra.mxu1 %v2397_v34  ;;  %v1171_v34 = vadd.s32 4294967263, %v919_v31 }
 0x27d   :  { %v3177_v30 = vpop.xlane.xlu0 %607  ;;  %v3179_v18 = vpop.xlane.xlu1 %826  ;;  %2349 = vmatprep.subr.msk.mxu1 %vm1386_vm13, %v80_v53 }
 0x280   :  { %2350 = vmatpush3.msk.msra.mxu1 %vm1386_vm13, %v80_v53  ;;  %vm936_vm13 = vcmask 195712  }
 0x281   :  { %v3193_v46 = vpop.xlane.xlu0 %829  ;;  %v3195_v0 = vpop.xlane.xlu1 %832 }
 0x285   :  { %v3203_v51 = vpop.xlane.xlu0 %706  ;;  %v3205_v19 = vpop.xlane.xlu1 %709 }
 0x289   :  { %v3210_v15 = vpop.xlane.xlu0 %712  ;;  %v3212_v41 = vpop.xlane.xlu1 %835 }
 0x28d   :  { %v743_v35 = vpop.xlane.xlu1 %742  ;;  %v731_v44 = vpop.xlane.xlu0 %730 }
 0x291   :  { %v734_v61 = vpop.xlane.xlu0 %733  ;;  %v611_v23 = vpop.xlane.xlu1 %610 }
 0x292   :  { %v948_v21 = vrot.slane %v611_v23, %v3219_v28  ;;  %v843_v56 = vmul.f32 0.015625, %v734_v61  ;;  %v3231_v23 = vsub.s32 %v1171_v34, %v2638_v59  ;;  %v839_v61 = vmul.f32 0.015625, %v3159_v11 }
 0x293   :  { %v846_v34 = vmul.f32 0.015625, %v743_v35 }
 0x294   :  { %v1175_v35 = vrot.slane %v839_v61, %v3231_v23 }
 0x295   :  { %v737_v45 = vpop.xlane.xlu0 %736  ;;  %v749_v57 = vpop.xlane.xlu1 %748 }
 0x296   :  { %v844_v24 = vmul.f32 0.015625, %v737_v45  ;;  %v842_v45 = vmul.f32 0.015625, %v731_v44 }
 0x299   :  { %v746_v33 = vpop.xlane.xlu0 %745  ;;  %v617_v52 = vpop.xlane.xlu1 %616 }
 0x29a   :  { %v957_v42 = vrot.slane %v617_v52, %v3222_v38  ;;  %v3237_v52 = vsub.s32 %v1178_v3, %v2638_v59  ;;  %v847_v31 = vmul.f32 0.015625, %v746_v33  ;;  %v841_v3 = vmul.f32 0.015625, %v3175_v62 }
 0x29b   :  { %v1199_v33 = vrot.slane %v843_v56, %v3231_v23 }
 0x29c   :  { %v1218_v44 = vrot.slane %v847_v31, %v3231_v23 }
 0x29d   :  { %v614_v53 = vpop.xlane.xlu0 %613  ;;  %v626_v10 = vpop.xlane.xlu1 %625 }
 0x29e   :  { %v952_v17 = vrot.slane %v614_v53, %v3216_v54  ;;  %v3234_v53 = vsub.s32 %v1166_v8, %v2638_v59 }
 0x2a0   :  { %v953_v37 = vsel %vm929_vm14, %v952_v17, %v948_v21  ;;  %v3240_v17 = vsub.s32 %v1185_v39, %v2638_v59  ;;  %v840_v21 = vmul.f32 0.015625, %v3163_v29  ;;  %v1170_v8 = vrot.slane %v838_v13, %v3234_v53 }
 0x2a1   :  { %v740_v2 = vpop.xlane.xlu0 %739  ;;  %v770_v4 = vpop.xlane.xlu1 %769  ;;  %v958_v36 = vsel %vm936_vm13, %v957_v42, %v953_v37  ;;  %v3245_v37 = vsub.s32 %v938_v22, %v2638_v59  ;;  %v1204_v39 = vrot.slane %v844_v24, %v3237_v52  ;;  %v1195_v29 = vrot.slane %v842_v45, %v3234_v53 }
 0x2a2   :  { %v845_v16 = vmul.f32 0.015625, %v740_v2  ;;  %v971_v2 = vrot.slane %v626_v10, %v3216_v54  ;;  %v848_v13 = vmul.f32 0.015625, %v749_v57  ;;  %v1182_v56 = vrot.slane %v840_v21, %v3237_v52 }
 0x2a3   :  { %v1214_v24 = vrot.slane %v846_v34, %v3234_v53  ;;  %v1177_v10 = vsel %vm1176_vm15, %v1175_v35, %v1170_v8  ;;  %v1200_v61 = vsel %vm1176_vm15, %v1199_v33, %v1195_v29 }
 0x2a4   :  { %v1209_v62 = vrot.slane %v845_v16, %v3240_v17  ;;  %v1205_v57 = vsel %vm1183_vm10, %v1204_v39, %v1200_v61  ;;  %v1223_v34 = vrot.slane %v848_v13, %v3237_v52 }
 0x2a5   :  { %v623_v42 = vpop.xlane.xlu0 %622  ;;  %v620_v32 = vpop.xlane.xlu1 %619  ;;  %v1219_v16 = vsel %vm1176_vm15, %v1218_v44, %v1214_v24  ;;  %v923_v44 = vrot.slane %v3171_v9, %v3219_v28 }
 0x2a6   :  { %v967_v11 = vrot.slane %v623_v42, %v3219_v28  ;;  %v962_v22 = vrot.slane %v620_v32, %v3245_v37  ;;  %v1189_v32 = vrot.slane %v841_v3, %v3240_v17  ;;  %v928_v3 = vrot.slane %v3169_v48, %v3216_v54 }
 0x2a8   :  { %v972_v12 = vsel %vm929_vm14, %v971_v2, %v967_v11  ;;  %v963_v31 = vsel %vm943_vm11, %v962_v22, %v958_v36  ;;  %v1210_v2 = vsel %vm1190_vm9, %v1209_v62, %v1205_v57  ;;  %v1184_v36 = vsel %vm1183_vm10, %v1182_v56, %v1177_v10 }
 0x2a9   :  { %v752_v42 = vpop.xlane.xlu0 %751  ;;  %v632_v45 = vpop.xlane.xlu1 %631  ;;  %v855_v11 = vmul.f32 0.015625, %v770_v4  ;;  %v1191_v33 = vsel %vm1190_vm9, %v1189_v32, %v1184_v36  ;;  %v1224_v22 = vsel %vm1183_vm10, %v1223_v34, %v1219_v16  ;;  %v935_v62 = vrot.slane %v3173_v6, %v3222_v38 }
 0x2aa   :  { %v849_v21 = vmul.f32 0.015625, %v752_v42  ;;  %v1363_v29 = vsel %vm234_vm2, %v1210_v2, %v1191_v33  ;;  %v942_v56 = vrot.slane %v3177_v30, %v3245_v37  ;;  %v930_v9 = vsel %vm929_vm14, %v928_v3, %v923_v44 }
 0x2ab   :  { %v1256_v24 = vrot.slane %v855_v11, %v3231_v23  ;;  %v937_v16 = vsel %vm936_vm13, %v935_v62, %v930_v9  ;;  %v981_v6 = vrot.slane %v632_v45, %v3245_v37 }
 0x2ac   :  { %v1228_v8 = vrot.slane %v849_v21, %v3240_v17  ;;  %v944_v21 = vsel %vm943_vm11, %v942_v56, %v937_v16 }
 0x2ad   :  { %v767_v39 = vpop.xlane.xlu0 %766  ;;  %v3275_v35 = vpop.xlane.xlu1 %646  ;;  %v1116_v34 = vsel %vm234_vm2, %v963_v31, %v944_v21 }
 0x2ae   :  { %v1229_v13 = vsel %vm1190_vm9, %v1228_v8, %v1224_v22  ;;  %v854_v4 = vmul.f32 0.015625, %v767_v39 }
 0x2af   :  { %v1364_v48 = vsel %vm236_vm3, %v1229_v13, %v1363_v29 }
 0x2b0   :  { %v1252_v10 = vrot.slane %v854_v4, %v3234_v53 }
 0x2b1   :  { %v629_v32 = vpop.xlane.xlu0 %628  ;;  %v776_v61 = vpop.xlane.xlu1 %775 }
 0x2b2   :  { %v1257_v42 = vsel %vm1176_vm15, %v1256_v24, %v1252_v10  ;;  %v976_v57 = vrot.slane %v629_v32, %v3222_v38  ;;  %v857_v36 = vmul.f32 0.015625, %v776_v61 }
 0x2b4   :  { %v977_v30 = vsel %vm936_vm13, %v976_v57, %v972_v12  ;;  %v1266_v39 = vrot.slane %v857_v36, %v3240_v17 }
 0x2b5   :  { %v982_v2 = vsel %vm943_vm11, %v981_v6, %v977_v30  ;;  %v773_v11 = vpop.xlane.xlu0 %772  ;;  %v656_v8 = vpop.xlane.xlu1 %655 }
 0x2b6   :  { %v856_v3 = vmul.f32 0.015625, %v773_v11  ;;  %v1117_v33 = vsel %vm236_vm3, %v982_v2, %v1116_v34 }
 0x2b8   :  { %v1261_v22 = vrot.slane %v856_v3, %v3237_v52 }
 0x2b9   :  { %v650_v44 = vpop.xlane.xlu0 %649  ;;  %v758_v45 = vpop.xlane.xlu1 %757 }
 0x2ba   :  { %v1262_v29 = vsel %vm1183_vm10, %v1261_v22, %v1257_v42  ;;  %v851_v4 = vmul.f32 0.015625, %v758_v45  ;;  %v1009_v22 = vrot.slane %v650_v44, %v3216_v54 }
 0x2bb   :  { %v1267_v12 = vsel %vm1190_vm9, %v1266_v39, %v1262_v29 }
 0x2bc   :  { %v1237_v32 = vrot.slane %v851_v4, %v3231_v23  ;;  %v1005_v4 = vrot.slane %v3275_v35, %v3219_v28 }
 0x2bd   :  { %v653_v13 = vpop.xlane.xlu0 %652  ;;  %v761_v31 = vpop.xlane.xlu1 %760 }
 0x2be   :  { %v852_v10 = vmul.f32 0.015625, %v761_v31  ;;  %v1014_v29 = vrot.slane %v653_v13, %v3222_v38  ;;  %v1019_v13 = vrot.slane %v656_v8, %v3245_v37 }
 0x2c0   :  { %v1242_v42 = vrot.slane %v852_v10, %v3237_v52 }
 0x2c1   :  { %v755_v62 = vpop.xlane.xlu0 %754  ;;  %v635_v56 = vpop.xlane.xlu1 %634 }
 0x2c2   :  { %v850_v24 = vmul.f32 0.015625, %v755_v62 }
 0x2c4   :  { %v1233_v61 = vrot.slane %v850_v24, %v3234_v53  ;;  %v986_v24 = vrot.slane %v635_v56, %v3219_v28 }
 0x2c5   :  { %v638_v9 = vpop.xlane.xlu0 %637  ;;  %v764_v57 = vpop.xlane.xlu1 %763 }
 0x2c6   :  { %v1238_v16 = vsel %vm1176_vm15, %v1237_v32, %v1233_v61  ;;  %v853_v6 = vmul.f32 0.015625, %v764_v57  ;;  %v990_v31 = vrot.slane %v638_v9, %v3216_v54 }
 0x2c7   :  { %v1243_v30 = vsel %vm1183_vm10, %v1242_v42, %v1238_v16 }
 0x2c8   :  { %v1247_v21 = vrot.slane %v853_v6, %v3240_v17  ;;  %v991_v44 = vsel %vm929_vm14, %v990_v31, %v986_v24  ;;  %v870_v31 = vmul.f32 0.015625, %v3132_v27 }
 0x2c9   :  { %v782_v34 = vpop.xlane.xlu0 %781  ;;  %v779_v2 = vpop.xlane.xlu1 %778 }
 0x2ca   :  { %v1248_v36 = vsel %vm1190_vm9, %v1247_v21, %v1243_v30 }
 0x2cb   :  { %v1365_v11 = vsel %vm3727_vm4, %v1248_v36, %v1364_v48  ;;  %v1010_v48 = vsel %vm929_vm14, %v1009_v22, %v1005_v4 }
 0x2cc   :  { %v3311_v3 = vsel %vm3726_vm5, %v1267_v12, %v1365_v11  ;;  %v1015_v32 = vsel %vm936_vm13, %v1014_v29, %v1010_v48  ;;  %v1328_v48 = vrot.slane %v870_v31, %v3234_v53 }
 0x2cd   :  { %v641_v39 = vpop.xlane.xlu0 %640  ;;  %v791_v45 = vpop.xlane.xlu1 %790  ;;  %v1020_v57 = vsel %vm943_vm11, %v1019_v13, %v1015_v32  ;;  %v3352_v32 = vmul.f32 0.015625, %v3141_v58  ;;  %v1081_v13 = vrot.slane %v3151_v7, %v3219_v28  ;;  %v1085_v58 = vrot.slane %v3143_v14, %v3216_v54 }
 0x2ce   :  { %v995_v62 = vrot.slane %v641_v39, %v3222_v38  ;;  %v3371_v7 = vmul.f32 0.015625, %v3195_v0 }
 0x2d0   :  { %v996_v9 = vsel %vm936_vm13, %v995_v62, %v991_v44  ;;  %v859_v44 = vmul.f32 0.015625, %v782_v34 }
 0x2d1   :  { %v785_v10 = vpop.xlane.xlu0 %784  ;;  %v644_v12 = vpop.xlane.xlu1 %643 }
 0x2d2   :  { %v1000_v61 = vrot.slane %v644_v12, %v3245_v37  ;;  %v875_v12 = vmul.f32 0.015625, %v3193_v46  ;;  %v860_v27 = vmul.f32 0.015625, %v785_v10  ;;  %v862_v10 = vmul.f32 0.015625, %v791_v45 }
 0x2d4   :  { %v1001_v35 = vsel %vm943_vm11, %v1000_v61, %v996_v9  ;;  %v858_v61 = vmul.f32 0.015625, %v779_v2  ;;  %v1351_v34 = vrot.slane %v875_v12, %v3231_v23  ;;  %v1275_v2 = vrot.slane %v859_v44, %v3231_v23 }
 0x2d5   :  { %v1118_v56 = vsel %vm3727_vm4, %v1001_v35, %v1117_v33  ;;  %v794_v16 = vpop.xlane.xlu0 %793  ;;  %v3329_v6 = vpop.xlane.xlu1 %658  ;;  %v871_v33 = vmul.f32 0.015625, %v3130_v60  ;;  %v874_v60 = vmul.f32 0.015625, %v3179_v18  ;;  %v1280_v31 = vrot.slane %v860_v27, %v3237_v52 }
 0x2d6   :  { %v3332_v42 = vsel %vm3726_vm5, %v1020_v57, %v1118_v56  ;;  %v3362_v57 = vmul.f32 0.015625, %v3157_v50  ;;  %v863_v56 = vmul.f32 0.015625, %v794_v16  ;;  %v1271_v50 = vrot.slane %v858_v61, %v3234_v53 }
 0x2d7   :  { %v1332_v24 = vrot.slane %v871_v33, %v3231_v23  ;;  %v3380_v33 = vsel %vm929_vm14, %v1085_v58, %v1081_v13  ;;  %v1347_v14 = vrot.slane %v874_v60, %v3234_v53  ;;  %v1356_v13 = vrot.slane %v3371_v7, %v3237_v52 }
 0x2d8   :  { %v1294_v12 = vrot.slane %v863_v56, %v3231_v23  ;;  %v1100_v60 = vrot.slane %v3203_v51, %v3219_v28  ;;  %v3395_v27 = vmul.f32 0.015625, %v3212_v41  ;;  %v1276_v16 = vsel %vm1176_vm15, %v1275_v2, %v1271_v50 }
 0x2d9   :  { %v3334_v21 = vpop.xlane.xlu0 %661  ;;  %v788_v30 = vpop.xlane.xlu1 %787  ;;  %v3365_v46 = vsel %vm1176_vm15, %v1332_v24, %v1328_v48  ;;  %v3388_v45 = vsel %vm1176_vm15, %v1351_v34, %v1347_v14  ;;  %v1290_v48 = vrot.slane %v862_v10, %v3234_v53  ;;  %v1024_v34 = vrot.slane %v3329_v6, %v3219_v28 }
 0x2da   :  { %v861_v44 = vmul.f32 0.015625, %v788_v30  ;;  %v1281_v30 = vsel %vm1183_vm10, %v1280_v31, %v1276_v16  ;;  %v1028_v7 = vrot.slane %v3334_v21, %v3216_v54  ;;  %vm1373_vm5 = vcmask 203776  }
 0x2db   :  { %vm1379_vm4 = vcmask 416768  }
 0x2dc   :  { %v1285_v41 = vrot.slane %v861_v44, %v3240_v17 }
 0x2dd   :  { %v797_v36 = vpop.xlane.xlu0 %796  ;;  %v3336_v11 = vpop.xlane.xlu1 %670 }
 0x2de   :  { %v864_v58 = vmul.f32 0.015625, %v797_v36  ;;  %v1295_v36 = vsel %vm1176_vm15, %v1294_v12, %v1290_v48  ;;  %v1029_v48 = vsel %vm929_vm14, %v1028_v7, %v1024_v34  ;;  %v1286_v44 = vsel %vm1190_vm9, %v1285_v41, %v1281_v30 }
 0x2e0   :  { %v1299_v50 = vrot.slane %v864_v58, %v3237_v52 }
 0x2e1   :  { %v3338_v8 = vpop.xlane.xlu0 %664  ;;  %v800_v22 = vpop.xlane.xlu1 %799 }
 0x2e2   :  { %v865_v14 = vmul.f32 0.015625, %v800_v22 }
 0x2e5   :  { %v3340_v39 = vpop.xlane.xlu0 %673  ;;  %v3342_v29 = vpop.xlane.xlu1 %667 }
 0x2e6   :  { %v1047_v6 = vrot.slane %v3340_v39, %v3216_v54  ;;  %v1038_v21 = vrot.slane %v3342_v29, %v3245_v37  ;;  %v1304_v39 = vrot.slane %v865_v14, %v3240_v17 }
 0x2e9   :  { %v3346_v4 = vpop.xlane.xlu0 %676  ;;  %v803_v62 = vpop.xlane.xlu1 %802 }
 0x2ea   :  { %v866_v56 = vmul.f32 0.015625, %v803_v62  ;;  %v1033_v62 = vrot.slane %v3338_v8, %v3222_v38  ;;  %v1052_v10 = vrot.slane %v3346_v4, %v3222_v38  ;;  %v1043_v8 = vrot.slane %v3336_v11, %v3219_v28 }
 0x2ec   :  { %v1309_v16 = vrot.slane %v866_v56, %v3234_v53  ;;  %v1034_v58 = vsel %vm936_vm13, %v1033_v62, %v1029_v48  ;;  %v1048_v11 = vsel %vm929_vm14, %v1047_v6, %v1043_v8  ;;  %v1109_v6 = vrot.slane %v3210_v15, %v3222_v38 }
 0x2ed   :  { %v3357_v9 = vpop.xlane.xlu0 %679  ;;  %v3359_v35 = vpop.xlane.xlu1 %682  ;;  %v1053_v34 = vsel %vm936_vm13, %v1052_v10, %v1048_v11 }
 0x2ee   :  { %v1057_v29 = vrot.slane %v3357_v9, %v3245_v37  ;;  %v1062_v4 = vrot.slane %v3359_v35, %v3219_v28  ;;  %v1039_v9 = vsel %vm943_vm11, %v1038_v21, %v1034_v58  ;;  %v1367_v21 = vsel %vm242_vm6, %v1286_v44, %v3311_v3 }
 0x2ef   :  { %v3765_v28 = vrot.slane %v3149_v55, %v3222_v38  ;;  %v3766_v44 = vrot.slane %v3362_v57, %v3240_v17 }
 0x2f0   :  { %v1058_v14 = vsel %vm943_vm11, %v1057_v29, %v1053_v34 }
 0x2f1   :  { %v806_v0 = vpop.xlane.xlu0 %805  ;;  %v812_v24 = vpop.xlane.xlu1 %811  ;;  %v1091_v51 = vsel %vm936_vm13, %v3765_v28, %v3380_v33  ;;  %v70_v28 = vld [vmem:[%s3679_s1 + $0x68] sm:$0xff] }
 0x2f2   :  { %v867_v61 = vmul.f32 0.015625, %v806_v0 }
 0x2f4   :  { %v1313_v18 = vrot.slane %v867_v61, %v3231_v23  ;;  %v869_v23 = vmul.f32 0.015625, %v812_v24  ;;  %v1300_v61 = vsel %vm1183_vm10, %v1299_v50, %v1295_v36 }
 0x2f5   :  { %v809_v0 = vpop.xlane.xlu0 %808  ;;  %v689_v22 = vpop.xlane.xlu1 %688  ;;  %v1305_v7 = vsel %vm1190_vm9, %v1304_v39, %v1300_v61 }
 0x2f6   :  { %v868_v2 = vmul.f32 0.015625, %v809_v0  ;;  %v1314_v53 = vsel %vm1176_vm15, %v1313_v18, %v1309_v16  ;;  %v1323_v30 = vrot.slane %v869_v23, %v3240_v17  ;;  %v1104_v18 = vrot.slane %v3205_v19, %v3216_v54 }
 0x2f7   :  { %v1071_v0 = vrot.slane %v689_v22, %v3222_v38  ;;  %vm1376_vm15 = vcmask 408576   ;;  %v1120_v19 = vsel %vm242_vm6, %v1039_v9, %v3332_v42  ;;  %v1368_v16 = vsel %vm244_vm7, %v1305_v7, %v1367_v21 }
 0x2f8   :  { %v1318_v31 = vrot.slane %v868_v2, %v3237_v52  ;;  %v1361_v2 = vrot.slane %v3395_v27, %v3240_v17  ;;  %v1121_v10 = vsel %vm244_vm7, %v1058_v14, %v1120_v19  ;;  %v1357_v23 = vsel %vm1183_vm10, %v1356_v13, %v3388_v45 }
 0x2f9   :  { %v686_v12 = vpop.xlane.xlu0 %685  ;;  %v704_v36 = vpop.xlane.xlu1 %703  ;;  %v1105_v3 = vsel %vm929_vm14, %v1104_v18, %v1100_v60  ;;  %v3764_v45 = vrot.slane %v3352_v32, %v3237_v52  ;;  %v3769_v19 = vsub.s32 5, %v2638_v59  ;;  %v1602_v21 = vsub.s32 6, %v2638_v59 }
 0x2fa   :  { %v1066_v24 = vrot.slane %v686_v12, %v3216_v54  ;;  %v1319_v56 = vsel %vm1183_vm10, %v1318_v31, %v1314_v53  ;;  %v1095_v22 = vrot.slane %v704_v36, %v3245_v37  ;;  %v1362_v8 = vsel %vm1190_vm9, %v1361_v2, %v1357_v23  ;;  %v60_v23 = vld [vmem:[%s3679_s1 + $0x18] sm:$0xff] }
 0x2fb   :  { %v1324_v62 = vsel %vm1190_vm9, %v1323_v30, %v1319_v56  ;;  %v1338_v13 = vsel %vm1183_vm10, %v3764_v45, %v3365_v46  ;;  %v1110_v29 = vsel %vm936_vm13, %v1109_v6, %v1105_v3  ;;  %v1526_v36 = vsub.s32 2, %v2638_v59  ;;  %v3530_v45 = vld [vmem:[%s3681_s2] sm:$0xff] }
 0x2fc   :  { %v1067_v35 = vsel %vm929_vm14, %v1066_v24, %v1062_v4  ;;  %v1369_v42 = vsel %vm246_vm8, %v1324_v62, %v1368_v16  ;;  %v1096_v60 = vsel %vm943_vm11, %v1095_v22, %v1091_v51  ;;  %v1343_v52 = vsel %vm1190_vm9, %v3766_v44, %v1338_v13  ;;  %v58_v16 = vld [vmem:[%s3679_s1 + $0x8] sm:$0xff]  ;;  %v72_v51 = vld [vmem:[%s3679_s1 + $0x78] sm:$0xff] }
 0x2fd   :  { %v692_v41 = vpop.xlane.xlu0 %691  ;;  %v1072_v54 = vsel %vm936_vm13, %v1071_v0, %v1067_v35  ;;  %v1370_v46 = vsel %vm234_vm2, %v1362_v8, %v1343_v52  ;;  %v3767_v35 = vld [vmem:[#allocation3_spill] sm:$0xff]  ;;  %v1545_v2 = vsub.s32 3, %v2638_v59  ;;  %v3768_v62 = vsub.s32 4, %v2638_v59  ;;  %v68_v8 = vld [vmem:[%s3679_s1 + $0x58] sm:$0xff] }
 0x2fe   :  { %v1076_v50 = vrot.slane %v692_v41, %v3245_v37 }
 0x2ff   :  { %v2065_v13 = vrot.slane %v3530_v45, %v1545_v2 }
 0x300   :  { %v1077_v27 = vsel %vm943_vm11, %v1076_v50, %v1072_v54 }
 0x301   :  { %v716_v15 = vpop.xlane.xlu0 %715  ;;  %v1122_v31 = vsel %vm246_vm8, %v1077_v27, %v1121_v10  ;;  %v1621_v27 = vsub.s32 7, %v2638_v59 }
 0x302   :  { %v1114_v48 = vrot.slane %v716_v15, %v3245_v37  ;;  %v1374_v39 = vsel %vm1373_vm5, %v1122_v31, %v1369_v42  ;;  %v62_v15 = vld [vmem:[%s3679_s1 + $0x28] sm:$0xff]  ;;  %v2401_v31 = vpack.c.bf16 %v60_v23, %v58_v16  ;;  %v64_v42 = vld [vmem:[%s3679_s1 + $0x38] sm:$0xff] }
 0x303   :  { %v1377_v37 = vsel %vm1376_vm15, %v1374_v39, 1.0  ;;  %v2405_v3 = vpack.c.bf16 %v64_v42, %v62_v15 }
 0x304   :  { %v1115_v12 = vsel %vm943_vm11, %v1114_v48, %v1110_v29  ;;  %2351 = vmatprep.mubr.msk.f32.mxu1 %vm1379_vm4, %v1377_v37  ;;  %v66_v48 = vld [vmem:[%s3679_s1 + $0x48] sm:$0xff]  ;;  %2402 = vmatprep.subr.bf16.mxu1 %v2401_v31  ;;  %v2075_v29 = vrot.slane %v3530_v45, %v1621_v27  ;;  %v2413_v37 = vpack.c.bf16 %v72_v51, %v70_v28 }
 0x305   :  { %v1123_v32 = vsel %vm234_vm2, %v1115_v12, %v1096_v60  ;;  %v2409_v39 = vpack.c.bf16 %v68_v8, %v66_v48  ;;  %v3772_v28 = vld [vmem:[#allocation11_spill] sm:$0xff] }
 0x306   :  { %v1375_v38 = vsel %vm1373_vm5, %v1123_v32, %v1370_v46  ;;  %vm3804_vm5 = vcmask 1043968  }
 0x307   :  { %v1378_v55 = vsel %vm1376_vm15, %v1375_v38, 1.0 }
 0x308   :  { %2352 = vmatmul.mubr.msk.f32.vlgmr.msra.gmra.mrb[0].mxu1 %vm1379_vm4, %v1378_v55  ;;  %vm3802_vm4 = vcmask 1044484  }
 0x309   :  { %2404 = vmatpush3.bf16.msra.mxu1 %v2401_v31  ;;  %v3770_v31 = vld [vmem:[#allocation10_spill] sm:$0xff] }
 0x30a   :  { %2406 = vmatprep.subr.bf16.mxu1 %v2405_v3 }
 0x30d   :  { %2408 = vmatpush3.bf16.msra.mxu1 %v2405_v3  ;;  %v3771_v3 = vld [vmem:[#allocation9_spill] sm:$0xff] }
 0x30e   :  { %2410 = vmatprep.subr.bf16.mxu1 %v2409_v39 }
 0x311   :  { %2412 = vmatpush3.bf16.msra.mxu1 %v2409_v39 }
 0x312   :  { %2414 = vmatprep.subr.bf16.mxu1 %v2413_v37 }
 0x315   :  { %2416 = vmatpush3.bf16.msra.mxu1 %v2413_v37  ;;  %v3773_v37 = vld [vmem:[#allocation13_spill] sm:$0xff] }
 0x3db   :  { %v2353_v33 = vpop.f32.mrb[0].mxu1 }
 0x3dc   :  { %1469 = vrot.lane.b32.xlu0 %v2353_v33, %s2453_s3  ;;  %v1456_v4 = vpop.f32.mrb[1].mxu1 }
 0x3dd   :  { %1467 = vrot.lane.b32.xlu1 %v1456_v4, %s2453_s3 }
 0x44e   :  { %v1470_v17 = vpop.permute.xlu0 %1469 }
 0x44f   :  { %v2286_v57 = vmul.f32 -1.442695, %v1470_v17  ;;  %v1468_v53 = vpop.permute.xlu1 %1467 }
 0x450   :  { %v1473_v24 = vsel %vm433_vm12, %v1456_v4, %v1468_v53 }
 0x451   :  { %2432 = vpow2.f32 %v2286_v57  ;;  %v2285_v61 = vmul.f32 -1.442695, %v1473_v24 }
 0x453   :  { %2434 = vpow2.f32 %v2285_v61 }
 0x45b   :  { %v2433_v58 = vpop.eup %2432 }
 0x45c   :  { %v1481_v11 = vadd.f32 1.0, %v2433_v58 }
 0x45d   :  { %v2435_v56 = vpop.eup %2434 }
 0x45e   :  { %2436 = vrcp.f32 %v1481_v11  ;;  %v1480_v9 = vadd.f32 1.0, %v2435_v56 }
 0x460   :  { %2438 = vrcp.f32 %v1480_v9 }
 0x468   :  { %v2437_v34 = vpop.eup %2436 }
 0x469   :  { %v1641_v30 = vrot.slane %v2437_v34, %v2823_v5  ;;  %v1660_v18 = vrot.slane %v2437_v34, %v3767_v35 }
 0x46a   :  { %v2439_v7 = vpop.eup %2438 }
 0x46b   :  { %1643 = vbcast.lane.b32.xlu0 %v1641_v30, 256  ;;  %1647 = vbcast.lane.b32.xlu1 %v1641_v30, 264  ;;  %v1508_v14 = vrot.slane %v2439_v7, %v3767_v35  ;;  %v1489_v0 = vrot.slane %v2439_v7, %v2823_v5  ;;  %v1527_v41 = vrot.slane %v2439_v7, %v1526_v36 }
 0x46c   :  { %v1546_v50 = vrot.slane %v2439_v7, %v1545_v2  ;;  %v1565_v6 = vrot.slane %v2439_v7, %v3768_v62  ;;  %v1584_v54 = vrot.slane %v2439_v7, %v3769_v19  ;;  %v1603_v22 = vrot.slane %v2439_v7, %v1602_v21 }
 0x46d   :  { %v1622_v10 = vrot.slane %v2439_v7, %v1621_v27 }
 0x46f   :  { %1662 = vbcast.lane.b32.xlu0 %v1660_v18, 256  ;;  %1666 = vbcast.lane.b32.xlu1 %v1660_v18, 264 }
 0x473   :  { %1670 = vbcast.lane.b32.xlu0 %v1660_v18, 272  ;;  %1651 = vbcast.lane.b32.xlu1 %v1641_v30, 272 }
 0x477   :  { %1510 = vbcast.lane.b32.xlu0 %v1508_v14, 256  ;;  %1491 = vbcast.lane.b32.xlu1 %v1489_v0, 256 }
 0x47b   :  { %1529 = vbcast.lane.b32.xlu0 %v1527_v41, 256  ;;  %1495 = vbcast.lane.b32.xlu1 %v1489_v0, 264 }
 0x47f   :  { %1499 = vbcast.lane.b32.xlu0 %v1489_v0, 272  ;;  %1514 = vbcast.lane.b32.xlu1 %v1508_v14, 264 }
 0x483   :  { %1548 = vbcast.lane.b32.xlu0 %v1546_v50, 256  ;;  %1533 = vbcast.lane.b32.xlu1 %v1527_v41, 264 }
 0x487   :  { %1537 = vbcast.lane.b32.xlu0 %v1527_v41, 272  ;;  %1518 = vbcast.lane.b32.xlu1 %v1508_v14, 272 }
 0x48b   :  { %1571 = vbcast.lane.b32.xlu0 %v1565_v6, 264  ;;  %1552 = vbcast.lane.b32.xlu1 %v1546_v50, 264 }
 0x48f   :  { %1522 = vbcast.lane.b32.xlu0 %v1508_v14, 280  ;;  %1567 = vbcast.lane.b32.xlu1 %v1565_v6, 256 }
 0x493   :  { %1586 = vbcast.lane.b32.xlu0 %v1584_v54, 256  ;;  %1503 = vbcast.lane.b32.xlu1 %v1489_v0, 280 }
 0x497   :  { %1541 = vbcast.lane.b32.xlu0 %v1527_v41, 280  ;;  %1556 = vbcast.lane.b32.xlu1 %v1546_v50, 272 }
 0x49b   :  { %1605 = vbcast.lane.b32.xlu0 %v1603_v22, 256  ;;  %1590 = vbcast.lane.b32.xlu1 %v1584_v54, 264 }
 0x49f   :  { %1560 = vbcast.lane.b32.xlu0 %v1546_v50, 280  ;;  %1575 = vbcast.lane.b32.xlu1 %v1565_v6, 272 }
 0x4a3   :  { %1624 = vbcast.lane.b32.xlu0 %v1622_v10, 256  ;;  %1609 = vbcast.lane.b32.xlu1 %v1603_v22, 264 }
 0x4a7   :  { %1579 = vbcast.lane.b32.xlu0 %v1565_v6, 280  ;;  %1594 = vbcast.lane.b32.xlu1 %v1584_v54, 272 }
 0x4ab   :  { %1598 = vbcast.lane.b32.xlu0 %v1584_v54, 280  ;;  %1628 = vbcast.lane.b32.xlu1 %v1622_v10, 264 }
 0x4af   :  { %1617 = vbcast.lane.b32.xlu0 %v1603_v22, 280  ;;  %1613 = vbcast.lane.b32.xlu1 %v1603_v22, 272 }
 0x4b3   :  { %1655 = vbcast.lane.b32.xlu0 %v1641_v30, 280  ;;  %1632 = vbcast.lane.b32.xlu1 %v1622_v10, 272 }
 0x4b7   :  { %1636 = vbcast.lane.b32.xlu1 %v1622_v10, 280  ;;  %2067 = vrot.lane.b32.xlu0 %v2065_v13, %s2451_s8 }
 0x4bb   :  { %1674 = vbcast.lane.b32.xlu1 %v1660_v18, 280 }
 0x4bf   :  { %2077 = vrot.lane.b32.xlu1 %v2075_v29, %s2451_s8 }
 0x4dd   :  { %v1644_v60 = vpop.permute.xlu0 %1643  ;;  %v1648_v12 = vpop.permute.xlu1 %1647 }
 0x4de   :  { %v1708_v44 = vsub.f32 %v2846_v47, %v1644_v60  ;;  %v1709_v52 = vsub.f32 %v2843_v40, %v1648_v12  ;;  %v3774_v60 = vld [vmem:[#allocation14_spill] sm:$0xff] }
 0x4df   :  { %v3775_v12 = vld [vmem:[#allocation6_spill] sm:$0xff] }
 0x4e0   :  { %v1748_v32 = vmul.f32 %v1708_v44, %v1708_v44  ;;  %v1749_v46 = vmul.f32 %v1709_v52, %v1709_v52 }
 0x4e1   :  { %v1663_v38 = vpop.permute.xlu0 %1662  ;;  %v1667_v55 = vpop.permute.xlu1 %1666 }
 0x4e2   :  { %v1860_v33 = vsel %vm81_vm0, %v1748_v32, 0.0  ;;  %v1861_v4 = vsel %vm81_vm0, %v1749_v46, 0.0  ;;  %v1712_v17 = vsub.f32 %v2899_v63, %v1663_v38  ;;  %v1713_v57 = vsub.f32 %v2906_v20, %v1667_v55  ;;  %v3776_v38 = vld [vmem:[#allocation12_spill] sm:$0xff] }
 0x4e3   :  { %v1862_v53 = vadd.f32 %v1861_v4, %v1860_v33  ;;  %v3777_v33 = vld [vmem:[#allocation20_spill] sm:$0xff] }
 0x4e4   :  { %v1752_v24 = vmul.f32 %v1712_v17, %v1712_v17  ;;  %v1753_v61 = vmul.f32 %v1713_v57, %v1713_v57 }
 0x4e5   :  { %v3548_v58 = vpop.permute.xlu0 %1670  ;;  %v1652_v47 = vpop.permute.xlu1 %1651 }
 0x4e6   :  { %v1873_v40 = vsel %vm81_vm0, %v1752_v24, 0.0  ;;  %v1874_v11 = vsel %vm81_vm0, %v1753_v61, 0.0  ;;  %v1710_v56 = vsub.f32 %v2854_v1, %v1652_v47  ;;  %v3778_v61 = vld [vmem:[#allocation22_spill] sm:$0xff] }
 0x4e7   :  { %v3553_v9 = vadd.f32 %v1874_v11, %v1873_v40 }
 0x4e8   :  { %v1750_v34 = vmul.f32 %v1710_v56, %v1710_v56 }
 0x4e9   :  { %v1511_v30 = vpop.permute.xlu0 %1510  ;;  %v1492_v35 = vpop.permute.xlu1 %1491 }
 0x4ea   :  { %v1863_v63 = vsel %vm81_vm0, %v1750_v34, 0.0  ;;  %v1676_v27 = vsub.f32 %v2879_v25, %v1492_v35  ;;  %v1680_v42 = vsub.f32 %v3770_v31, %v1511_v30 }
 0x4eb   :  { %v3556_v20 = vadd.f32 %v1863_v63, %v1862_v53 }
 0x4ec   :  { %v1716_v39 = vmul.f32 %v1676_v27, %v1676_v27  ;;  %v1720_v52 = vmul.f32 %v1680_v42, %v1680_v42 }
 0x4ed   :  { %v1530_v18 = vpop.permute.xlu0 %1529  ;;  %v1496_v7 = vpop.permute.xlu1 %1495 }
 0x4ee   :  { %v1677_v22 = vsub.f32 %v2869_v49, %v1496_v7  ;;  %v1684_v48 = vsub.f32 %v3771_v3, %v1530_v18  ;;  %v1756_v17 = vsel %vm81_vm0, %v1716_v39, 0.0  ;;  %v1769_v35 = vsel %vm81_vm0, %v1720_v52, 0.0  ;;  %v3779_v18 = vld [vmem:[#allocation16_spill] sm:$0xff] }
 0x4f0   :  { %v1717_v8 = vmul.f32 %v1677_v22, %v1677_v22  ;;  %v1724_v32 = vmul.f32 %v1684_v48, %v1684_v48 }
 0x4f1   :  { %v1500_v14 = vpop.permute.xlu0 %1499  ;;  %v1515_v0 = vpop.permute.xlu1 %1514 }
 0x4f2   :  { %v1678_v10 = vsub.f32 %v2876_v26, %v1500_v14  ;;  %v1681_v16 = vsub.f32 %v2945_v43, %v1515_v0  ;;  %v1757_v46 = vsel %vm81_vm0, %v1717_v8, 0.0  ;;  %v3780_v14 = vld [vmem:[#allocation21_spill] sm:$0xff] }
 0x4f3   :  { %v1758_v63 = vadd.f32 %v1757_v46, %v1756_v17  ;;  %v3786_v46 = vld [vmem:[#allocation25_spill] sm:$0xff] }
 0x4f4   :  { %v1718_v13 = vmul.f32 %v1678_v10, %v1678_v10  ;;  %v1721_v29 = vmul.f32 %v1681_v16, %v1681_v16  ;;  %v3782_v10 = vld [vmem:[#allocation17_spill] sm:$0xff] }
 0x4f5   :  { %v1549_v41 = vpop.permute.xlu0 %1548  ;;  %v1534_v2 = vpop.permute.xlu1 %1533 }
 0x4f6   :  { %v1685_v49 = vsub.f32 %v3773_v37, %v1534_v2  ;;  %v1759_v57 = vsel %vm81_vm0, %v1718_v13, 0.0  ;;  %v1770_v53 = vsel %vm81_vm0, %v1721_v29, 0.0  ;;  %v1688_v47 = vsub.f32 %v3778_v61, %v1549_v41  ;;  %v3783_v29 = vld [vmem:[#allocation23_spill] sm:$0xff] }
 0x4f7   :  { %v1782_v2 = vsel %vm81_vm0, %v1724_v32, 0.0  ;;  %v1760_v22 = vadd.f32 %v1759_v57, %v1758_v63  ;;  %v1771_v41 = vadd.f32 %v1770_v53, %v1769_v35 }
 0x4f8   :  { %v1725_v40 = vmul.f32 %v1685_v49, %v1685_v49 }
 0x4f9   :  { %v1538_v50 = vpop.permute.xlu0 %1537  ;;  %v1519_v62 = vpop.permute.xlu1 %1518 }
 0x4fa   :  { %v1682_v51 = vsub.f32 %v3772_v28, %v1519_v62  ;;  %v1686_v55 = vsub.f32 %v3776_v38, %v1538_v50  ;;  %v3781_v62 = vld [vmem:[#allocation15_spill] sm:$0xff]  ;;  %v1783_v31 = vsel %vm81_vm0, %v1725_v40, 0.0 }
 0x4fb   :  { %v3784_v28 = vld [vmem:[#allocation19_spill] sm:$0xff]  ;;  %v1784_v52 = vadd.f32 %v1783_v31, %v1782_v2  ;;  %v3787_v2 = vld [vmem:[#allocation28_spill] sm:$0xff] }
 0x4fc   :  { %v1722_v24 = vmul.f32 %v1682_v51, %v1682_v51  ;;  %v1726_v50 = vmul.f32 %v1686_v55, %v1686_v55 }
 0x4fd   :  { %v1572_v6 = vpop.permute.xlu0 %1571  ;;  %v1553_v19 = vpop.permute.xlu1 %1552 }
 0x4fe   :  { %v1689_v4 = vsub.f32 %v3777_v33, %v1553_v19  ;;  %v1693_v19 = vsub.f32 %v3781_v62, %v1572_v6  ;;  %v1772_v27 = vsel %vm81_vm0, %v1722_v24, 0.0  ;;  %v1785_v37 = vsel %vm81_vm0, %v1726_v50, 0.0  ;;  %v3788_v62 = vld [vmem:[#allocation18_spill] sm:$0xff] }
 0x4ff   :  { %v1773_v49 = vadd.f32 %v1772_v27, %v1771_v41  ;;  %v1786_v24 = vadd.f32 %v1785_v37, %v1784_v52  ;;  %v3790_v41 = vld [vmem:[#allocation7_spill] sm:$0xff] }
 0x500   :  { %v1714_v27 = vsub.f32 %v3790_v41, %v3548_v58 }
 0x501   :  { %v1523_v1 = vpop.permute.xlu0 %1522  ;;  %v1568_v54 = vpop.permute.xlu1 %1567 }
 0x502   :  { %v1683_v25 = vsub.f32 %v3774_v60, %v1523_v1  ;;  %v1729_v1 = vmul.f32 %v1689_v4, %v1689_v4  ;;  %v1692_v16 = vsub.f32 %v3782_v10, %v1568_v54  ;;  %v1733_v60 = vmul.f32 %v1693_v19, %v1693_v19 }
 0x504   :  { %v1723_v11 = vmul.f32 %v1683_v25, %v1683_v25  ;;  %v1796_v54 = vsel %vm81_vm0, %v1729_v1, 0.0  ;;  %v1732_v25 = vmul.f32 %v1692_v16, %v1692_v16  ;;  %v1809_v61 = vsel %vm81_vm0, %v1733_v60, 0.0  ;;  %v3789_v1 = vld [vmem:[#allocation27_spill] sm:$0xff]  ;;  %v3791_v16 = vld [vmem:[#allocation26_spill] sm:$0xff]  ;;  %v3792_v60 = vld [vmem:[#allocation29_spill] sm:$0xff] }
 0x505   :  { %v1587_v23 = vpop.permute.xlu0 %1586  ;;  %v1504_v15 = vpop.permute.xlu1 %1503 }
 0x506   :  { %v1679_v26 = vsub.f32 %v3775_v12, %v1504_v15  ;;  %v1728_v15 = vmul.f32 %v1688_v47, %v1688_v47  ;;  %v1774_v42 = vsel %vm87_vm1, %v1723_v11, 0.0  ;;  %v1696_v38 = vsub.f32 %v3786_v46, %v1587_v23 }
 0x507   :  { %v1775_v32 = vadd.f32 %v1774_v42, %v1773_v49  ;;  %v1808_v40 = vsel %vm81_vm0, %v1732_v25, 0.0 }
 0x508   :  { %v1719_v56 = vmul.f32 %v1679_v26, %v1679_v26  ;;  %v3785_v26 = vld [vmem:[#allocation24_spill] sm:$0xff]  ;;  %v1795_v4 = vsel %vm81_vm0, %v1728_v15, 0.0  ;;  %v1736_v35 = vmul.f32 %v1696_v38, %v1696_v38  ;;  %v1810_v10 = vadd.f32 %v1809_v61, %v1808_v40  ;;  %v3795_v40 = vld [vmem:[#allocation31_spill] sm:$0xff] }
 0x509   :  { %v1542_v44 = vpop.permute.xlu0 %1541  ;;  %v1557_v43 = vpop.permute.xlu1 %1556  ;;  %v1797_v47 = vadd.f32 %v1796_v54, %v1795_v4  ;;  %v1776_v23 = vrot.slane %v1775_v32, 4 }
 0x50a   :  { %v1687_v7 = vsub.f32 %v3779_v18, %v1542_v44  ;;  %v1690_v0 = vsub.f32 %v3780_v14, %v1557_v43  ;;  %v1761_v3 = vsel %vm87_vm1, %v1719_v56, 0.0 }
 0x50b   :  { %v1762_v12 = vadd.f32 %v1761_v3, %v1760_v22 }
 0x50c   :  { %v1727_v39 = vmul.f32 %v1687_v7, %v1687_v7  ;;  %v1730_v13 = vmul.f32 %v1690_v0, %v1690_v0 }
 0x50d   :  { %v1606_v34 = vpop.permute.xlu0 %1605  ;;  %v1591_v30 = vpop.permute.xlu1 %1590  ;;  %v1763_v11 = vrot.slane %v1762_v12, 4 }
 0x50e   :  { %v1697_v44 = vsub.f32 %v3785_v26, %v1591_v30  ;;  %v1787_v17 = vsel %vm87_vm1, %v1727_v39, 0.0  ;;  %v1798_v57 = vsel %vm81_vm0, %v1730_v13, 0.0  ;;  %v1700_v15 = vsub.f32 %v3791_v16, %v1606_v34  ;;  %v3793_v26 = vld [vmem:[#allocation33_spill] sm:$0xff] }
 0x50f   :  { %v1788_v63 = vadd.f32 %v1787_v17, %v1786_v24  ;;  %v1799_v18 = vadd.f32 %v1798_v57, %v1797_v47  ;;  %v1764_v42 = vadd.f32 %v1763_v11, %v1762_v12  ;;  %v1777_v39 = vadd.f32 %v1776_v23, %v1775_v32 }
 0x510   :  { %v1737_v56 = vmul.f32 %v1697_v44, %v1697_v44  ;;  %v1821_v13 = vsel %vm81_vm0, %v1736_v35, 0.0  ;;  %v1740_v32 = vmul.f32 %v1700_v15, %v1700_v15  ;;  %v3798_v15 = vld [vmem:[#allocation2_spill] sm:$0xff] }
 0x511   :  { %v1561_v48 = vpop.permute.xlu0 %1560  ;;  %v1576_v8 = vpop.permute.xlu1 %1575  ;;  %v1765_v52 = vrot.slane %v1764_v42, 2  ;;  %v1778_v23 = vrot.slane %v1777_v39, 2 }
 0x512   :  { %v1691_v6 = vsub.f32 %v3783_v29, %v1561_v48  ;;  %v1694_v51 = vsub.f32 %v3784_v28, %v1576_v8  ;;  %v1822_v3 = vsel %vm81_vm0, %v1737_v56, 0.0  ;;  %v1789_v29 = vrot.slane %v1788_v63, 4  ;;  %v3796_v56 = vld [vmem:[#allocation30_spill] sm:$0xff] }
 0x513   :  { %v1823_v54 = vadd.f32 %v1822_v3, %v1821_v13 }
 0x514   :  { %v1731_v43 = vmul.f32 %v1691_v6, %v1691_v6  ;;  %v1734_v53 = vmul.f32 %v1694_v51, %v1694_v51  ;;  %v1790_v38 = vadd.f32 %v1789_v29, %v1788_v63  ;;  %v1834_v63 = vsel %vm81_vm0, %v1740_v32, 0.0 }
 0x515   :  { %v1625_v55 = vpop.permute.xlu0 %1624  ;;  %v1610_v33 = vpop.permute.xlu1 %1609 }
 0x516   :  { %v1800_v30 = vsel %vm87_vm1, %v1731_v43, 0.0  ;;  %v1811_v0 = vsel %vm81_vm0, %v1734_v53, 0.0  ;;  %v1701_v50 = vsub.f32 %v3787_v2, %v1610_v33  ;;  %v1754_v43 = vmul.f32 %v1714_v27, %v1714_v27  ;;  %v3794_v33 = vld [vmem:[#allocation32_spill] sm:$0xff] }
 0x517   :  { %v1801_v31 = vadd.f32 %v1800_v30, %v1799_v18  ;;  %v1812_v6 = vadd.f32 %v1811_v0, %v1810_v10  ;;  %v1704_v4 = vsub.f32 %v3794_v33, %v1625_v55  ;;  %v1766_v2 = vadd.f32 %v1765_v52, %v1764_v42  ;;  %v3797_v10 = vld [vmem:[#allocation5_spill] sm:$0xff] }
 0x518   :  { %v1741_v37 = vmul.f32 %v1701_v50, %v1701_v50  ;;  %v1791_v50 = vrot.slane %v1790_v38, 2  ;;  %v1876_v33 = vsel %vm81_vm0, %v1754_v43, 0.0 }
 0x519   :  { %v1580_v7 = vpop.permute.xlu0 %1579  ;;  %v1595_v14 = vpop.permute.xlu1 %1594  ;;  %v1802_v25 = vrot.slane %v1801_v31, 4  ;;  %v1744_v41 = vmul.f32 %v1704_v4, %v1704_v4  ;;  %v1877_v43 = vadd.f32 %v1876_v33, %v3553_v9 }
 0x51a   :  { %v1695_v19 = vsub.f32 %v3788_v62, %v1580_v7  ;;  %v1698_v22 = vsub.f32 %v3789_v1, %v1595_v14  ;;  %v1835_v61 = vsel %vm81_vm0, %v1741_v37, 0.0  ;;  %v1792_v37 = vadd.f32 %v1791_v50, %v1790_v38 }
 0x51b   :  { %v1803_v35 = vadd.f32 %v1802_v25, %v1801_v31  ;;  %v1836_v62 = vadd.f32 %v1835_v61, %v1834_v63 }
 0x51c   :  { %v1735_v48 = vmul.f32 %v1695_v19, %v1695_v19  ;;  %v1738_v8 = vmul.f32 %v1698_v22, %v1698_v22 }
 0x51d   :  { %v1599_v28 = vpop.permute.xlu0 %1598  ;;  %v1629_v51 = vpop.permute.xlu1 %1628  ;;  %v1804_v3 = vrot.slane %v1803_v35, 2 }
 0x51e   :  { %v1813_v49 = vsel %vm87_vm1, %v1735_v48, 0.0  ;;  %v1824_v58 = vsel %vm81_vm0, %v1738_v8, 0.0  ;;  %v1699_v34 = vsub.f32 %v3792_v60, %v1599_v28  ;;  %v1705_v44 = vsub.f32 %v3793_v26, %v1629_v51 }
 0x51f   :  { %v1814_v12 = vadd.f32 %v1813_v49, %v1812_v6  ;;  %v1825_v57 = vadd.f32 %v1824_v58, %v1823_v54  ;;  %v1779_v51 = vadd.f32 %v1778_v23, %v1777_v39  ;;  %v1767_v39 = vrot.slane %v1766_v2, 1 }
 0x520   :  { %v1739_v46 = vmul.f32 %v1699_v34, %v1699_v34  ;;  %v1745_v7 = vmul.f32 %v1705_v44, %v1705_v44  ;;  %v1847_v34 = vsel %vm81_vm0, %v1744_v41, 0.0  ;;  %v1805_v44 = vadd.f32 %v1804_v3, %v1803_v35 }
 0x521   :  { %v1815_v17 = vrot.slane %v1814_v12, 4  ;;  %v1618_v53 = vpop.permute.xlu0 %1617  ;;  %v1614_v24 = vpop.permute.xlu1 %1613 }
 0x522   :  { %v1826_v47 = vsel %vm87_vm1, %v1739_v46, 0.0  ;;  %v1703_v11 = vsub.f32 %v3795_v40, %v1618_v53  ;;  %v1702_v30 = vsub.f32 %v3796_v56, %v1614_v24  ;;  %v1848_v8 = vsel %vm81_vm0, %v1745_v7, 0.0  ;;  %v3800_v56 = vld [vmem:[#allocation8_spill] sm:$0xff] }
 0x523   :  { %v1827_v18 = vadd.f32 %v1826_v47, %v1825_v57  ;;  %v1816_v14 = vadd.f32 %v1815_v17, %v1814_v12  ;;  %v3799_v12 = vld [vmem:[#allocation34_spill] sm:$0xff]  ;;  %v1849_v52 = vadd.f32 %v1848_v8, %v1847_v34  ;;  %v1780_v47 = vrot.slane %v1779_v51, 1 }
 0x524   :  { %v1743_v55 = vmul.f32 %v1703_v11, %v1703_v11  ;;  %v1742_v0 = vmul.f32 %v1702_v30, %v1702_v30  ;;  %v1793_v40 = vrot.slane %v1792_v37, 1  ;;  %v1806_v23 = vrot.slane %v1805_v44, 1 }
 0x525   :  { %v1828_v19 = vrot.slane %v1827_v18, 4  ;;  %v1656_v1 = vpop.permute.xlu0 %1655  ;;  %v1633_v22 = vpop.permute.xlu1 %1632  ;;  %v1817_v29 = vrot.slane %v1816_v14, 2  ;;  %v1768_v7 = vadd.f32 %v1767_v39, %v1766_v2 }
 0x526   :  { %v1837_v27 = vsel %vm81_vm0, %v1742_v0, 0.0  ;;  %v1711_v16 = vsub.f32 %v3797_v10, %v1656_v1  ;;  %v1706_v31 = vsub.f32 %v3798_v15, %v1633_v22  ;;  %v1839_v42 = vsel %vm87_vm1, %v1743_v55, 0.0 }
 0x527   :  { %v1829_v48 = vadd.f32 %v1828_v19, %v1827_v18  ;;  %v1838_v13 = vadd.f32 %v1837_v27, %v1836_v62  ;;  %v1818_v38 = vadd.f32 %v1817_v29, %v1816_v14  ;;  %v1781_v19 = vadd.f32 %v1780_v47, %v1779_v51 }
 0x528   :  { %v1751_v6 = vmul.f32 %v1711_v16, %v1711_v16  ;;  %v1746_v28 = vmul.f32 %v1706_v31, %v1706_v31  ;;  %v1794_v1 = vadd.f32 %v1793_v40, %v1792_v37  ;;  %v1807_v41 = vadd.f32 %v1806_v23, %v1805_v44 }
 0x529   :  { %v1830_v49 = vrot.slane %v1829_v48, 2  ;;  %v1840_v58 = vadd.f32 %v1839_v42, %v1838_v13  ;;  %v1637_v60 = vpop.permute.xlu1 %1636  ;;  %v1819_v63 = vrot.slane %v1818_v38, 1  ;;  %v1886_v15 = vsub.f32 0.0, %v1768_v7 }
 0x52a   :  { %v1865_v54 = vsel %vm87_vm1, %v1751_v6, 0.0  ;;  %v1850_v25 = vsel %vm81_vm0, %v1746_v28, 0.0  ;;  %v1707_v26 = vsub.f32 %v3799_v12, %v1637_v60  ;;  %v1887_v8 = vsub.f32 0.0, %v1781_v19 }
 0x52b   :  { %v1841_v32 = vrot.slane %v1840_v58, 4  ;;  %v1866_v46 = vadd.f32 %v1865_v54, %v3556_v20  ;;  %v1831_v17 = vadd.f32 %v1830_v49, %v1829_v48  ;;  %v1851_v24 = vadd.f32 %v1850_v25, %v1849_v52 }
 0x52c   :  { %v1747_v4 = vmul.f32 %v1707_v26, %v1707_v26  ;;  %v1820_v31 = vadd.f32 %v1819_v63, %v1818_v38  ;;  %v1888_v13 = vsub.f32 0.0, %v1794_v1  ;;  %v1889_v42 = vsub.f32 0.0, %v1807_v41 }
 0x52d   :  { %v1842_v57 = vadd.f32 %v1841_v32, %v1840_v58  ;;  %v1867_v53 = vrot.slane %v1866_v46, 4  ;;  %v1675_v61 = vpop.permute.xlu1 %1674  ;;  %v1832_v55 = vrot.slane %v1831_v17, 1  ;;  %v1906_v51 = vsel %vm234_vm2, %v1887_v8, %v1886_v15 }
 0x52e   :  { %v1852_v11 = vsel %vm87_vm1, %v1747_v4, 0.0  ;;  %v1715_v30 = vsub.f32 %v3800_v56, %v1675_v61  ;;  %v1890_v37 = vsub.f32 0.0, %v1820_v31  ;;  %v1907_v25 = vsel %vm236_vm3, %v1888_v13, %v1906_v51 }
 0x52f   :  { %v1843_v35 = vrot.slane %v1842_v57, 2  ;;  %v1868_v18 = vadd.f32 %v1867_v53, %v1866_v46  ;;  %v1853_v20 = vadd.f32 %v1852_v11, %v1851_v24  ;;  %v1833_v3 = vadd.f32 %v1832_v55, %v1831_v17 }
 0x530   :  { %v1755_v14 = vmul.f32 %v1715_v30, %v1715_v30  ;;  %vm3803_vm3 = vcmask 1041408  }
 0x531   :  { %v1844_v0 = vadd.f32 %v1843_v35, %v1842_v57  ;;  %v1869_v50 = vrot.slane %v1868_v18, 2  ;;  %v1854_v62 = vrot.slane %v1853_v20, 4  ;;  %v1891_v49 = vsub.f32 0.0, %v1833_v3 }
 0x532   :  { %v1878_v22 = vsel %vm87_vm1, %v1755_v14, 0.0  ;;  %vm3801_vm1 = vcmask 1043459  }
 0x533   :  { %v1845_v27 = vrot.slane %v1844_v0, 1  ;;  %v1855_v10 = vadd.f32 %v1854_v62, %v1853_v20  ;;  %v1879_v16 = vadd.f32 %v1878_v22, %v1877_v43  ;;  %v1870_v48 = vadd.f32 %v1869_v50, %v1868_v18 }
 0x534   :  { %v1908_v44 = vsel %vm3801_vm1, %v1889_v42, %v1907_v25 }
 0x535   :  { %v1856_v9 = vrot.slane %v1855_v10, 2  ;;  %v1880_v2 = vrot.slane %v1879_v16, 4  ;;  %v1846_v29 = vadd.f32 %v1845_v27, %v1844_v0  ;;  %v1871_v58 = vrot.slane %v1870_v48, 1 }
 0x536   :  { %v1909_v52 = vsel %vm3802_vm4, %v1890_v37, %v1908_v44 }
 0x537   :  { %v1857_v6 = vadd.f32 %v1856_v9, %v1855_v10  ;;  %v1881_v28 = vadd.f32 %v1880_v2, %v1879_v16  ;;  %v1892_v54 = vsub.f32 0.0, %v1846_v29  ;;  %v1872_v32 = vadd.f32 %v1871_v58, %v1870_v48  ;;  %v2068_v2 = vpop.permute.xlu0 %2067  ;;  %v2078_v29 = vpop.permute.xlu1 %2077 }
 0x538   :  { %v1910_v39 = vsel %vm242_vm6, %v1891_v49, %v1909_v52  ;;  %vm3806_vm6 = vmmov %vm3804_vm5 }
 0x539   :  { %v1858_v60 = vrot.slane %v1857_v6, 1  ;;  %v1882_v34 = vrot.slane %v1881_v28, 2  ;;  %v1911_v38 = vsel %vm244_vm7, %v1892_v54, %v1910_v39  ;;  %v1894_v57 = vsub.f32 0.0, %v1872_v32 }
 0x53a   :  { %vm3807_vm7 = vcmask 521216  }
 0x53b   :  { %v1883_v12 = vadd.f32 %v1882_v34, %v1881_v28  ;;  %v1859_v26 = vadd.f32 %v1858_v60, %v1857_v6  ;;  %vm3809_vm9 = vmmov %vm3807_vm7 }
 0x53d   :  { %v1884_v46 = vrot.slane %v1883_v12, 1  ;;  %v1893_v33 = vsub.f32 0.0, %v1859_v26 }
 0x53f   :  { %v1885_v4 = vadd.f32 %v1884_v46, %v1883_v12  ;;  %v1912_v17 = vsel %vm246_vm8, %v1893_v33, %v1911_v38 }
 0x540   :  { %2370 = vmatprep.mubr.msk.f32.mxu1 %vm81_vm0, %v1912_v17 }
 0x541   :  { %v1895_v53 = vsub.f32 0.0, %v1885_v4 }
 0x543   :  { %v1913_v24 = vsel %vm234_vm2, %v1895_v53, %v1894_v57  ;;  %vm3805_vm2 = vmmov %vm3803_vm3 }
 0x544   :  { %2371 = vmatmul.mubr.msk.f32.vlgmr.msra.gmra.mrb[2].mxu1 %vm81_vm0, %v1913_v24  ;;  %vm3808_vm8 = vmmov %vm3805_vm2 }
 0x617   :  { %v2372_v61 = vpop.f32.mrb[2].mxu1 }
 0x618   :  { %v2029_v47 = vrot.slane %v2372_v61, 6  ;;  %v1984_v40 = vpop.f32.mrb[3].mxu1 }
 0x619   :  { %v2028_v11 = vrot.slane %v1984_v40, 6  ;;  %v1993_v42 = vsel %vm3807_vm7, %v1984_v40, 0.0 }
 0x61a   :  { %v1994_v49 = vrot.slane %v1993_v42, 4 }
 0x61b   :  { %v2030_v56 = vsel %vm3803_vm3, %v2028_v11, %v2029_v47 }
 0x61c   :  { %v2032_v30 = vsel %vm3804_vm5, %v2030_v56, 0.0  ;;  %v1995_v58 = vadd.f32 %v1994_v49, %v1993_v42 }
 0x61d   :  { %v2033_v23 = vrot.slane %v2032_v30, 4 }
 0x61e   :  { %v1996_v60 = vrot.slane %v1995_v58, 2 }
 0x61f   :  { %v2034_v35 = vadd.f32 %v2033_v23, %v2032_v30 }
 0x620   :  { %v1997_v25 = vadd.f32 %v1996_v60, %v1995_v58 }
 0x621   :  { %v2035_v18 = vrot.slane %v2034_v35, 2 }
 0x622   :  { %v1998_v32 = vrot.slane %v1997_v25, 1 }
 0x623   :  { %v2036_v20 = vadd.f32 %v2035_v18, %v2034_v35 }
 0x624   :  { %v1999_v38 = vadd.f32 %v1998_v32, %v1997_v25 }
 0x625   :  { %v2037_v43 = vrot.slane %v2036_v20, 1 }
 0x626   :  { %v2000_v4 = vmul.f32 0.16666667, %v1999_v38 }
 0x627   :  { %v2038_v7 = vadd.f32 %v2037_v43, %v2036_v20  ;;  %v2017_v43 = vrot.slane %v3530_v45, %v1526_v36 }
 0x628   :  { %v2001_v17 = vsub.f32 %v1984_v40, %v2000_v4 }
 0x629   :  { %v2039_v63 = vmul.f32 0.25, %v2038_v7 }
 0x62a   :  { %v2002_v57 = vmul.f32 %v2001_v17, %v2001_v17 }
 0x62b   :  { %v2040_v14 = vsub.f32 %v1984_v40, %v2039_v63  ;;  %v2041_v55 = vsub.f32 %v2372_v61, %v2039_v63  ;;  %v2022_v40 = vrot.slane %v3530_v45, %v1602_v21  ;;  %v2454_v45 = vmov 1983009808  }
 0x62c   :  { %v2003_v53 = vsel %vm3809_vm9, %v2002_v57, 0.0 }
 0x62d   :  { %v2042_v0 = vmul.f32 %v2040_v14, %v2040_v14  ;;  %v2043_v50 = vmul.f32 %v2041_v55, %v2041_v55  ;;  %v2004_v24 = vrot.slane %v2003_v53, 4 }
 0x62f   :  { %v2046_v62 = vrot.slane %v2042_v0, 6  ;;  %v2047_v19 = vrot.slane %v2043_v50, 6  ;;  %v2005_v61 = vadd.f32 %v2004_v24, %v2003_v53  ;;  %v3810_v0 = vld [vmem:[#allocation4_spill] sm:$0xff] }
 0x631   :  { %v2048_v1 = vsel %vm3805_vm2, %v2046_v62, %v2047_v19  ;;  %v2006_v47 = vrot.slane %v2005_v61, 2 }
 0x632   :  { %v2050_v22 = vsel %vm3806_vm6, %v2048_v1, 0.0 }
 0x633   :  { %v2051_v41 = vrot.slane %v2050_v22, 4  ;;  %v2007_v11 = vadd.f32 %v2006_v47, %v2005_v61 }
 0x635   :  { %v2052_v27 = vadd.f32 %v2051_v41, %v2050_v22  ;;  %v2008_v56 = vrot.slane %v2007_v11, 1 }
 0x637   :  { %v2053_v10 = vrot.slane %v2052_v27, 2  ;;  %v2009_v30 = vadd.f32 %v2008_v56, %v2007_v11 }
 0x639   :  { %v2054_v16 = vadd.f32 %v2053_v10, %v2052_v27  ;;  %v2010_v23 = vmul.f32 0.16666667, %v2009_v30 }
 0x63b   :  { %v2055_v15 = vrot.slane %v2054_v16, 1  ;;  %v2011_v35 = vadd.f32 1e-05, %v2010_v23 }
 0x63d   :  { %v2056_v31 = vadd.f32 %v2055_v15, %v2054_v16  ;;  %v2198_v15 = vunpack.c.l.s4 %v2454_v45 }
 0x63f   :  { %v2057_v3 = vmul.f32 0.25, %v2056_v31 }
 0x641   :  { %v2058_v48 = vadd.f32 1e-05, %v2057_v3 }
 0x643   :  { %2440 = vrsqrt.f32 %v2058_v48 }
 0x64d   :  { %v2441_v9 = vpop.eup %2440 }
 0x64e   :  { %v2060_v8 = vmul.f32 %v2441_v9, %v2040_v14  ;;  %v2061_v13 = vmul.f32 %v2441_v9, %v2041_v55 }
 0x650   :  { %v2070_v6 = vmul.f32 %v2068_v2, %v2060_v8  ;;  %v2071_v28 = vmul.f32 %v2068_v2, %v2061_v13  ;;  %v2199_v13 = vunpack.c.0.s8 %v2198_v15 }
 0x652   :  { %v2080_v51 = vadd.f32 %v2078_v29, %v2070_v6  ;;  %v2081_v37 = vadd.f32 %v2078_v29, %v2071_v28  ;;  %v2455_v29 = vmov 1934713408  }
 0x653   :  { %v2231_v42 = vunpack.c.l.s4 %v2455_v29 }
 0x654   :  { %2442 = vtanh.f32 %v2080_v51 }
 0x655   :  { %2444 = vtanh.f32 %v2081_v37 }
 0x656   :  { %2446 = vrsqrt.f32 %v2011_v35 }
 0x65e   :  { %v2443_v34 = vpop.eup %2442 }
 0x65f   :  { %v2445_v54 = vpop.eup %2444  ;;  %v2084_v12 = vadd.f32 1.0, %v2443_v34  ;;  %v2202_v34 = vsub.s32 %v2199_v13, %v2638_v59 }
 0x660   :  { %v2085_v26 = vadd.f32 1.0, %v2445_v54  ;;  %v2447_v18 = vpop.eup %2446  ;;  %v2232_v54 = vunpack.c.0.s8 %v2231_v42 }
 0x661   :  { %v2146_v44 = vmul.f32 0.5, %v2084_v12  ;;  %v2013_v20 = vmul.f32 %v2447_v18, %v2001_v17 }
 0x662   :  { %v2147_v52 = vmul.f32 0.5, %v2085_v26  ;;  %v2235_v57 = vsub.s32 %v2232_v54, %v2638_v59 }
 0x663   :  { %v2186_v46 = vrot.slane %v2146_v44, 6  ;;  %v2018_v7 = vmul.f32 %v2017_v43, %v2013_v20 }
 0x664   :  { %v2187_v33 = vrot.slane %v2147_v52, 6 }
 0x665   :  { %v2023_v63 = vadd.f32 %v2022_v40, %v2018_v7 }
 0x666   :  { %v2188_v39 = vsel %vm3808_vm8, %v2186_v46, %v2187_v33 }
 0x667   :  { %2189 = vrot.lane.b32.xlu0 %v2188_v39, %s2451_s8  ;;  %2448 = vtanh.f32 %v2023_v63 }
 0x671   :  { %v2449_v14 = vpop.eup %2448 }
 0x672   :  { %v2025_v55 = vadd.f32 1.0, %v2449_v14 }
 0x674   :  { %v2094_v50 = vrot.slane %v2025_v55, %v3810_v0  ;;  %v2087_v62 = vcombine.high %v2025_v55, %v2025_v55 }
 0x676   :  { %v2102_v19 = vcombine.high %v2094_v50, %v2094_v50  ;;  %v2101_v1 = vrot.slane %v2087_v62, %v3810_v0  ;;  %v2110_v22 = vrot.slane %v2094_v50, %v3810_v0 }
 0x678   :  { %v2124_v41 = vrot.slane %v2102_v19, %v3810_v0  ;;  %v2103_v36 = vcombine.high %v2101_v1, %v2101_v1  ;;  %v2132_v27 = vcombine.high %v2110_v22, %v2110_v22  ;;  %v2117_v16 = vrot.slane %v2101_v1, %v3810_v0 }
 0x679   :  { %v2140_v31 = vmul.f32 0.5, %v2110_v22 }
 0x67a   :  { %v2133_v10 = vcombine.high %v2124_v41, %v2124_v41  ;;  %v2131_v21 = vrot.slane %v2103_v36, %v3810_v0  ;;  %v2141_v3 = vmul.f32 0.5, %v2124_v41  ;;  %v2142_v48 = vmul.f32 0.5, %v2132_v27 }
 0x67b   :  { %v2144_v2 = vmul.f32 0.5, %v2117_v16  ;;  %v2157_v6 = vrot.slane %v2140_v31, %v2823_v5 }
 0x67c   :  { %v2143_v9 = vmul.f32 0.5, %v2133_v10  ;;  %v2145_v8 = vmul.f32 0.5, %v2131_v21  ;;  %v2161_v28 = vrot.slane %v2141_v3, %v2823_v5  ;;  %v2165_v51 = vrot.slane %v2142_v48, %v2823_v5 }
 0x67d   :  { %v2173_v49 = vrot.slane %v2144_v2, %v2823_v5 }
 0x67e   :  { %v2169_v37 = vrot.slane %v2143_v9, %v2823_v5  ;;  %v2177_v58 = vrot.slane %v2145_v8, %v2823_v5 }
 0x6d9   :  { %v2190_v60 = vpop.permute.xlu0 %2189 }
 0x6da   :  { %v2192_v25 = vadd.f32 %v2190_v60, %v2157_v6  ;;  %v2193_v12 = vadd.f32 %v2190_v60, %v2161_v28  ;;  %v2194_v26 = vadd.f32 %v2190_v60, %v2165_v51  ;;  %v2195_v44 = vadd.f32 %v2190_v60, %v2169_v37 }
 0x6db   :  { %v2212_v52 = vadd.f32 %v2190_v60, %v2173_v49  ;;  %v2220_v32 = vadd.f32 %v2190_v60, %v2177_v58 }
 0x6dc   :  { %v2196_v46 = vcombine.low %v2192_v25, %v2194_v26  ;;  %v2204_v33 = vcombine.low %v2193_v12, %v2195_v44 }
 0x6dd   :  { %v2219_v39 = vrot.slane %v2212_v52, %v2202_v34  ;;  %v2227_v38 = vrot.slane %v2220_v32, %v2202_v34 }
 0x6de   :  { %v2203_v4 = vrot.slane %v2196_v46, %v2202_v34  ;;  %v2211_v17 = vrot.slane %v2204_v33, %v2202_v34 }
 0x6df   :  { %v2245_v53 = vcombine.high %v2219_v39, %v2227_v38  ;;  %v2244_v5 = vcombine.low %v2219_v39, %v2227_v38 }
 0x6e0   :  { %v2229_v24 = vcombine.high %v2203_v4, %v2211_v17  ;;  %v2228_v61 = vcombine.low %v2203_v4, %v2211_v17 }
 0x6e1   :  { %v2259_v11 = vrot.slane %v2245_v53, %v2235_v57  ;;  %v2252_v30 = vrot.slane %v2244_v5, %v2235_v57 }
 0x6e2   :  { %v2243_v47 = vrot.slane %v2229_v24, %v2235_v57  ;;  %v2236_v56 = vrot.slane %v2228_v61, %v2235_v57 }
 0x6e4   :  { %v2263_v23 = vcombine.high %v2243_v47, %v2259_v11  ;;  %v2261_v35 = vcombine.high %v2236_v56, %v2252_v30  ;;  %v2262_v18 = vcombine.low %v2243_v47, %v2259_v11  ;;  %v2260_v20 = vcombine.low %v2236_v56, %v2252_v30 }
 0x6e6   :  { %2269 = vrot.lane.b32.xlu0 %v2263_v23, %s2451_s8  ;;  %2265 = vrot.lane.b32.xlu1 %v2261_v35, %s2451_s8 }
 0x758   :  { %v2270_v43 = vpop.permute.xlu0 %2269  ;;  %v2266_v7 = vpop.permute.xlu1 %2265 }
 0x759   :  { %v2273_v59 = vsel %vm81_vm0, %v2262_v18, %v2270_v43  ;;  %v2272_v40 = vsel %vm81_vm0, %v2260_v20, %v2266_v7 }
 0x75a   :  { %2275 = vst [vmem:[%s3683_s4 + $0x8] sm:$0x3f] %v2273_v59  ;;  %2274 = vst [vmem:[%s3683_s4] sm:$0x3f] %v2272_v40 }

</bundles_post_ra>
